<compile_context>
chip_gen: v7x
topology: tpu7x:2x2x1
jax: 0.10.0
libtpu: 0.0.40
codegen_flags: <defaults>
</compile_context>

<pallas_src>
import jax
import jax.numpy as jnp
from jax import lax
from jax.experimental import pallas as pl
from jax.experimental.pallas import tpu as pltpu


def _lora_linear_kernel(x_ref, w_ref, xa_ref, lb_ref, b_ref, o_ref):
    # Base path: y = x_tile @ W_tile.T  -- NT contraction (no explicit
    # transpose), f32 accumulation on the MXU.
    y = lax.dot_general(
        x_ref[...],
        w_ref[...],
        dimension_numbers=(((1,), (1,)), ((), ())),
        preferred_element_type=jnp.float32,
    )
    # LoRA path: ((x @ A) * scaling)_tile @ B_tile -- tiny (tb,rank)@(rank,tn).
    # xa was computed once in the wrapper; scaling is already folded in.
    y = y + jnp.dot(xa_ref[...], lb_ref[...], preferred_element_type=jnp.float32)
    # Bias add in f32, single downcast on store (lane-dense tn-wide stores).
    o_ref[...] = (y + b_ref[...].astype(jnp.float32)).astype(o_ref.dtype)


def _pick_tile(dim, target, align):
    """Largest align-multiple divisor of `dim` <= target; full dim if small."""
    if dim <= target:
        return dim
    t = (target // align) * align
    while t >= align:
        if dim % t == 0:
            return t
        t -= align
    # No aligned divisor: fall back to an aligned tile (Pallas pads the last,
    # partial tile).
    return max(align, (target // align) * align)


def lora_layer_forward(
    x, weight, bias, lora_A, lora_B, *, alpha, rank,
    tb=256, tn=256, compute_dtype=None,
):
    """LoRALayer forward.  x: (batch, in_dim) -> (batch, out_dim)."""
    batch, in_dim = x.shape
    out_dim = weight.shape[0]
    assert weight.shape == (out_dim, in_dim)
    assert bias.shape == (out_dim,)
    assert lora_A.shape == (out_dim, rank)
    assert lora_B.shape == (rank, in_dim)
    # Inherited from the PyTorch module: its `.T` only shape-checks when square.
    assert in_dim == out_dim, "LoRALayer as written requires in_dim == out_dim"

    scaling = float(alpha) / float(rank)
    out_dtype = x.dtype
    cdt = jnp.dtype(compute_dtype) if compute_dtype is not None else jnp.dtype(x.dtype)

    xc = x.astype(cdt)
    wc = weight.astype(cdt)
    lbc = lora_B.astype(cdt)
    bias2d = bias.reshape(1, out_dim).astype(jnp.float32)

    # Hoisted LoRA left matmul: one XLA matmul for the whole batch; fold the
    # scalar `scaling` here (batch*rank elements, once) instead of scaling a
    # (tb, tn) tile every grid step.
    xa = jnp.dot(xc, lora_A.astype(cdt), preferred_element_type=jnp.float32)
    xa = (xa * scaling).astype(cdt)

    tb = _pick_tile(batch, tb, 8)
    tn = _pick_tile(out_dim, tn, 128)
    # Slow (leading) axis: out_dim tiles -> weight block index constant across
    # the inner batch sweep (weight read from HBM exactly once; megacore shards
    # out_dim on v7x).  Fast (inner) axis: batch tiles.
    grid = (pl.cdiv(out_dim, tn), pl.cdiv(batch, tb))

    # Explicit VMEM budget from actual tile bytes (double-buffered operands +
    # output) with headroom; v5e's default scoped limit (16 MiB) is too small
    # for realistic tiles, and the computed value keeps us honest on v7x 64 MiB.
    cbytes = jnp.dtype(cdt).itemsize
    obytes = jnp.dtype(out_dtype).itemsize
    tile_bytes = ((tb * in_dim + tn * in_dim + tb * rank + rank * tn) * cbytes
                  + tn * 4 + tb * tn * obytes)
    vmem_limit = int(min(max(2 * tile_bytes * 1.25 + (1 << 20), 32 * 1024 * 1024),
                         100 * 1024 * 1024))

    cost = pl.CostEstimate(
        flops=2 * batch * in_dim * out_dim + 2 * batch * rank * out_dim,
        transcendentals=0,
        bytes_accessed=int((x.size + weight.size + lora_B.size + xa.size) * cbytes
                           + bias.size * 4 + batch * out_dim * obytes),
    )

    return pl.pallas_call(
        _lora_linear_kernel,
        out_shape=jax.ShapeDtypeStruct((batch, out_dim), out_dtype),
        grid_spec=pltpu.PrefetchScalarGridSpec(
            num_scalar_prefetch=0,
            grid=grid,
            in_specs=[
                pl.BlockSpec((tb, in_dim), lambda j, i: (i, 0)),   # x batch tile (full K)
                pl.BlockSpec((tn, in_dim), lambda j, i: (j, 0)),   # weight rows (slow axis only)
                pl.BlockSpec((tb, rank), lambda j, i: (i, 0)),     # hoisted (x@A)*s tile
                pl.BlockSpec((rank, tn), lambda j, i: (0, j)),     # lora_B cols tile
                pl.BlockSpec((1, tn), lambda j, i: (0, j)),        # bias tile
            ],
            out_specs=pl.BlockSpec((tb, tn), lambda j, i: (i, j)),
        ),
        compiler_params=pltpu.CompilerParams(
            dimension_semantics=("parallel", "parallel"),
            vmem_limit_bytes=vmem_limit,
        ),
        cost_estimate=cost,
    )(xc, wc, xa, lbc, bias2d)


if __name__ == "__main__":
    # Small, lane-friendly shapes; in_dim must equal out_dim (see module note).
    # scaling = alpha / rank = 2.0, same as the module's defaults (4096/2048).
    batch, dim, rank, alpha = 512, 512, 64, 128

    key = jax.random.PRNGKey(0)
    kx, kw, kb, ka, klb = jax.random.split(key, 5)
    x = jax.random.normal(kx, (batch, dim), dtype=jnp.float32)
    # Module __init__ zeros weight/bias/lora_B; use random values so the check
    # against the reference is non-trivial.
    weight = jax.random.normal(kw, (dim, dim), dtype=jnp.float32) * 0.05
    bias = jax.random.normal(kb, (dim,), dtype=jnp.float32) * 0.05
    lora_A = jax.random.normal(ka, (dim, rank), dtype=jnp.float32)
    lora_B = jax.random.normal(klb, (rank, dim), dtype=jnp.float32) * 0.02

    scaling = alpha / rank

    # ---- f32 compute path ----
    out = lora_layer_forward(x, weight, bias, lora_A, lora_B,
                             alpha=alpha, rank=rank, tb=256, tn=256)
    out = jax.block_until_ready(out)

    w_eff = weight + jnp.matmul(lora_A, lora_B,
                                precision=lax.Precision.HIGHEST).T * scaling
    ref = jnp.dot(x, w_eff.T, precision=lax.Precision.HIGHEST) + bias
    assert out.shape == (batch, dim)
    assert jnp.allclose(out, ref, atol=5e-2, rtol=2e-2), "f32 mismatch vs reference"

    # ---- bf16 compute path (f32 accumulation; halves HBM/VMEM traffic) ----
    out_bf = lora_layer_forward(x, weight, bias, lora_A, lora_B,
                                alpha=alpha, rank=rank, tb=256, tn=256,
                                compute_dtype=jnp.bfloat16)
    out_bf = jax.block_until_ready(out_bf)

    xb = x.astype(jnp.bfloat16)
    wb = weight.astype(jnp.bfloat16)
    ab = lora_A.astype(jnp.bfloat16)
    bb = lora_B.astype(jnp.bfloat16)
    xa_ref = (jnp.dot(xb, ab, preferred_element_type=jnp.float32)
              * scaling).astype(jnp.bfloat16)
    ref_bf = (jnp.dot(xb, wb.T, preferred_element_type=jnp.float32)
              + jnp.dot(xa_ref, bb, preferred_element_type=jnp.float32)
              + bias)
    assert jnp.allclose(out_bf.astype(jnp.float32), ref_bf.astype(jnp.float32),
                        atol=2e-1, rtol=5e-2), "bf16 mismatch vs reference"

    print("KERNEL_OK")
</pallas_src>

<mosaic_0001>
module attributes {stable_mosaic.version = 11 : i64} {
  func.func @_lora_linear_kernel(%arg0: i32, %arg1: i32, %arg2: memref<256x512xf32, #tpu.memory_space<vmem>>, %arg3: memref<256x512xf32, #tpu.memory_space<vmem>>, %arg4: memref<256x64xf32, #tpu.memory_space<vmem>>, %arg5: memref<64x256xf32, #tpu.memory_space<vmem>>, %arg6: memref<1x256xf32, #tpu.memory_space<vmem>>, %arg7: memref<256x256xf32, #tpu.memory_space<vmem>>) attributes {dimension_semantics = [#tpu.dimension_semantics<parallel>, #tpu.dimension_semantics<parallel>], iteration_bounds = array<i64: 2, 2>, scalar_prefetch = 0 : i64, scratch_operands = 0 : i64, tpu.core_type = #tpu.core_type<tc>, window_params = [{transform_indices = @transform_0, window_bounds = array<i64: 256, 512>}, {transform_indices = @transform_1, window_bounds = array<i64: 256, 512>}, {transform_indices = @transform_2, window_bounds = array<i64: 256, 64>}, {transform_indices = @transform_3, window_bounds = array<i64: 64, 256>}, {transform_indices = @transform_4, window_bounds = array<i64: 1, 256>}, {transform_indices = @transform_5, window_bounds = array<i64: 256, 256>}]} {
    %c0 = arith.constant 0 : index
    %c0_0 = arith.constant 0 : index
    %0 = vector.load %arg2[%c0, %c0_0] : memref<256x512xf32, #tpu.memory_space<vmem>>, vector<256x512xf32>
    %c0_1 = arith.constant 0 : index
    %c0_2 = arith.constant 0 : index
    %1 = vector.load %arg3[%c0_1, %c0_2] : memref<256x512xf32, #tpu.memory_space<vmem>>, vector<256x512xf32>
    %cst = arith.constant dense<0.000000e+00> : vector<256x256xf32>
    %2 = tpu.matmul %0, %1, %cst {dimension_numbers = #tpu.dot_dimension_numbers<[1], [1], [0], [0], [0, 0, 1, 0], [], []>} : vector<256x512xf32>, vector<256x512xf32>, vector<256x256xf32> -> vector<256x256xf32>
    %c0_3 = arith.constant 0 : index
    %c0_4 = arith.constant 0 : index
    %3 = vector.load %arg4[%c0_3, %c0_4] : memref<256x64xf32, #tpu.memory_space<vmem>>, vector<256x64xf32>
    %c0_5 = arith.constant 0 : index
    %c0_6 = arith.constant 0 : index
    %4 = vector.load %arg5[%c0_5, %c0_6] : memref<64x256xf32, #tpu.memory_space<vmem>>, vector<64x256xf32>
    %cst_7 = arith.constant dense<0.000000e+00> : vector<256x256xf32>
    %5 = tpu.matmul %3, %4, %cst_7 {dimension_numbers = #tpu.dot_dimension_numbers<[1], [0], [0], [1], [0, 0, 1, 1], [], []>} : vector<256x64xf32>, vector<64x256xf32>, vector<256x256xf32> -> vector<256x256xf32>
    %6 = arith.addf %2, %5 : vector<256x256xf32>
    %c0_8 = arith.constant 0 : index
    %c0_9 = arith.constant 0 : index
    %7 = vector.load %arg6[%c0_8, %c0_9] : memref<1x256xf32, #tpu.memory_space<vmem>>, vector<1x256xf32>
    %8 = vector.broadcast %7 : vector<1x256xf32> to vector<256x256xf32>
    %9 = arith.addf %6, %8 : vector<256x256xf32>
    %c0_10 = arith.constant 0 : index
    %c0_11 = arith.constant 0 : index
    %10 = vector.load %arg7[%c0_10, %c0_11] : memref<256x256xf32, #tpu.memory_space<vmem>>, vector<256x256xf32>
    tpu.vector_store %arg7[%c0_10, %c0_11], %9 {strides = array<i32>} : memref<256x256xf32, #tpu.memory_space<vmem>>, vector<256x256xf32>,
    return
  }
  func.func @transform_0(%arg0: i32, %arg1: i32) -> (i32, i32) {
    %c0_i32 = arith.constant 0 : i32
    %c0_i32_0 = arith.constant 0 : i32
    return %arg1, %c0_i32 : i32, i32
  }
  func.func @transform_1(%arg0: i32, %arg1: i32) -> (i32, i32) {
    %c0_i32 = arith.constant 0 : i32
    %c0_i32_0 = arith.constant 0 : i32
    return %arg0, %c0_i32 : i32, i32
  }
  func.func @transform_2(%arg0: i32, %arg1: i32) -> (i32, i32) {
    %c0_i32 = arith.constant 0 : i32
    %c0_i32_0 = arith.constant 0 : i32
    return %arg1, %c0_i32 : i32, i32
  }
  func.func @transform_3(%arg0: i32, %arg1: i32) -> (i32, i32) {
    %c0_i32 = arith.constant 0 : i32
    %c0_i32_0 = arith.constant 0 : i32
    return %c0_i32, %arg0 : i32, i32
  }
  func.func @transform_4(%arg0: i32, %arg1: i32) -> (i32, i32) {
    %c0_i32 = arith.constant 0 : i32
    %c0_i32_0 = arith.constant 0 : i32
    return %c0_i32, %arg0 : i32, i32
  }
  func.func @transform_5(%arg0: i32, %arg1: i32) -> (i32, i32) {
    %c0_i32 = arith.constant 0 : i32
    return %arg1, %arg0 : i32, i32
  }
}

</mosaic_0001>

<bundles_post_ra>
// kernel: tpu_custom_call.1
= control target key start
LH: loop header
LB: loop body
LE: loop exit
PB: predicated region body
PF: predicated region fallthrough
CT: control target
= control target key end

     0   :  { %10 = vsyncpa [#allocation3], 0  ;;  %s3836_s0 = inlined_call_operand.hbm [shape: f32[512,512], index: 0, kind: input, shape index: {}]   ;;  %s3837_s1 = inlined_call_operand.hbm [shape: f32[512,512], index: 1, kind: input, shape index: {}]   ;;  %s3838_s2 = inlined_call_operand.vmem [shape: f32[512,64], index: 2, kind: input, shape index: {}]   ;;  %s3839_s3 = inlined_call_operand.vmem [shape: f32[64,512], index: 3, kind: input, shape index: {}]   ;;  %s3840_s4 = inlined_call_operand.vmem [shape: f32[1,512], index: 4, kind: input, shape index: {}]   ;;  %s3841_s5 = inlined_call_operand.hbm [shape: f32[512,512], index: 5, kind: output, shape index: {}]  }
   0x1   :  { %12 = vsyncpa [#allocation3 + $0x1], 0 }
   0x2   :  { %13 = vsyncpa [#allocation6], 0 }
   0x3   :  { %15 = vsyncpa [#allocation6 + $0x1], 0 }
   0x4   :  { %16 = vsyncpa [#allocation4], 0 }
   0x5   :  { %18 = vsyncpa [#allocation4 + $0x1], 0  ;;  %s2641_s18 = smov 0   ;;  %s2643_s19 = smov 0  }
   0x6   :  { %s2645_s20 = smov 0   ;;  %s2647_s21 = smov 0  }
   0x7   :  { %s2649_s22 = smov 0   ;;  %s2651_s23 = smov 0  }
   0x8   :  { %s2653_s24 = smov 0   ;;  %s2655_s25 = smov 0  }
   0x9   :  { %s2657_s26 = smov 0   ;;  %s2659_s27 = smov 0  }
   0xa   :  { %s2661_s28 = smov 0   ;;  %s2663_s29 = smov 0  }
   0xb   :  { %s2665_s30 = smov 0   ;;  %s2667_s6 = smov 0  }
   0xc LB: > { %3854 = sst [smem:[#allocation12_spill]] %s2548_s18  ;;  %s3842_s7 = sadd.s32 4294967295, %s2600_s6   ;;  %s2600_s6 = sphi %s2667_s6, %s24_s6   ;;  %s2596_s30 = sphi %s2665_s30, %s3932_s30   ;;  %s2592_s29 = sphi %s2663_s29, %s3921_s29   ;;  %s2588_s28 = sphi %s2661_s28, %s3931_s28   ;;  %s2584_s27 = sphi %s2659_s27, %s3920_s27   ;;  %s2580_s26 = sphi %s2657_s26, %s3930_s26   ;;  %s2576_s25 = sphi %s2655_s25, %s3929_s25   ;;  %s2572_s24 = sphi %s2653_s24, %s3928_s24   ;;  %s2568_s23 = sphi %s2651_s23, %s3927_s23   ;;  %s2564_s22 = sphi %s2649_s22, %s3926_s22   ;;  %s2560_s21 = sphi %s2647_s21, %s3925_s21   ;;  %s2556_s20 = sphi %s2645_s20, %s3916_s20   ;;  %s2552_s19 = sphi %s2643_s19, %s3924_s19   ;;  %s2548_s18 = sphi %s2641_s18, %s3923_s18  }
   0xd   : > { %3855 = sst [smem:[#allocation13_spill]] %s2556_s20  ;;  %s33_s9 = sadd.s32 1, %s2592_s29 }
   0xe   : > { %3856 = sst [smem:[#allocation14_spill]] %s2580_s26  ;;  %s36_s10 = sadd.s32 1, %s2596_s30 }
   0xf   : > { %3857 = sst [smem:[#allocation15_spill]] %s2592_s29  ;;  %p34_p0 = scmp.ge.s32.totalorder %s33_s9, 2 }
  0x10   : > { %s43_s11 = sadd.s32 1, %s2580_s26  ;;  %p50_p1 = scmp.ne.s32.totalorder %s2580_s26, %s2576_s25 }
  0x11   : > { %p51_p2 = scmp.eq.s32.totalorder %s2600_s6, 0  ;;  %s3934_s9 = smov (%p34_p0, %s33_s9), 0 }
  0x12   : > { %3858 = sst [smem:[#allocation16_spill]] %s3934_s9  ;;  %s3936_s10 = smov (!%p34_p0, %s36_s10), %s2596_s30 }
  0x13   : > { %s40_s12 = ssub.s32 %s2592_s29, %s3934_s9  ;;  %p2724_p3 = por %p51_p2, %p50_p1 }
  0x14   : > { %p38_p4 = scmp.ge.s32.totalorder %s3936_s10, 2  ;;  %p41_p5 = scmp.eq.s32.totalorder %s40_s12, 0 }
  0x15   : > { %p56_p6 = scmp.ne.s32.totalorder %s2576_s25, %s2572_s24  ;;  %p57_p7 = scmp.eq.s32.totalorder %s3842_s7, 0 }
  0x16   : > { %s3938_s10 = smov (%p38_p4, %s3936_s10), 0  ;;  %s69_s17 = sadd.s32 1, %s2568_s23 }
  0x17   : > { %3860 = sst [smem:[#allocation17_spill]] %s3938_s10  ;;  %p2736_p8 = por %p57_p7, %p56_p6 }
  0x18   : > { %s2734_s14 = scalar_select %p41_p5, %s2580_s26, %s43_s11  }
  0x19   : > { %s3862_s15 = scalar_select %p2736_p8, 1, 0 }
  0x1a   : > { %3861 = sst [smem:[#allocation18_spill]] %s2734_s14  ;;  %s66_s16 = ssub.s32 %s2596_s30, %s3938_s10 }
  0x1b   : > { %p67_p9 = scmp.eq.s32.totalorder %s66_s16, 0  ;;  %p76_p10 = scmp.ne.s32.totalorder %s2568_s23, %s2564_s22 }
  0x1c   : > { %p82_p11 = scmp.ne.s32.totalorder %s2564_s22, %s2560_s21  ;;  %s172_s7 = sor.u32 %s66_s16, %s40_s12 }
  0x1d   : > { %s2748_s24 = scalar_select %p67_p9, %s2568_s23, %s69_s17  }
  0x1e   : > { %p2752_p12 = por %p76_p10, %p51_p2  ;;  %p2756_p13 = por %p82_p11, %p57_p7 }
  0x1f   : > { %3863 = sst [smem:[#allocation19_spill]] %s2748_s24  ;;  %s175_s9 = sadd.s32 1, %s2556_s20 }
  0x20   : > { %s3865_s11 = scalar_select %p2756_p13, 1, 0 }
  0x21   : > { %p173_p0 = scmp.eq.s32.totalorder %s172_s7, 0  ;;  %p185_p1 = scmp.ne.s32.totalorder %s2556_s20, %s2552_s19 }
  0x22   : > { %s3866_s10 = sadd.s32 4294967295, %s2600_s6   ;;  %p191_p5 = scmp.ne.s32.totalorder %s2552_s19, %s2548_s18 }
  0x23   : > { %p186_p4 = scmp.eq.s32.totalorder %s3866_s10, 3  ;;  %s3869_s17 = sadd.s32 4294967294, %s2600_s6  }
  0x24   : > { %s2768_s14 = scalar_select %p173_p0, %s2556_s20, %s175_s9  }
  0x25   : > { %p2770_p6 = por %p186_p4, %p185_p1  ;;  %p192_p2 = scmp.eq.s32.totalorder %s3869_s17, 3 }
  0x26   : > { %3867 = sst [smem:[#allocation20_spill]] %s2768_s14  ;;  %p1896_p7 = scmp.ge.s32.totalorder %s2600_s6, 4 }
  0x27   : > { %s3868_s21 = scalar_select %p2770_p6, 1, 0 }
  0x28   : > { %p2776_p9 = por %p192_p2, %p191_p5  ;;  %208 = sbr.rel (%p1896_p7) target bundleno = 106 (0x6a), region = 16 }
  0x29   : > { %s212_s7 = sand.u32 (!%p1896_p7), 1, %s2580_s26   ;;  %s1956_s10 = sshll.u32 (!%p1896_p7), %s2592_s29, 14 }
  0x2a   : > { %s3870_s24 = scalar_select %p2776_p9, 1, 0 }
  0x2b   : > { %s1897_s9 = sshll.u32 (!%p1896_p7), %s212_s7, 10  ;;  %s2786_s14 = scalar_lea.hbm (!%p1896_p7), %s3836_s0, %s1956_s10 }
  0x2c   : > { %3871 = sst [smem:[#allocation21_spill]] %s3870_s24  ;;  %s216_s17 = scalar_lea.vmem (!%p1896_p7), [#allocation2], %s1897_s9 }
  0x2d   : > { %s224_s20 = sshll.u32 (!%p1896_p7), %s216_s17, 4  ;;  %s2790_s24 = scalar_lea.sflag (!%p1896_p7), [#allocation3], %s212_s7  ;;  %s2788_s20 = int_to_ptr.vmem [resolvable:$true] %s224_s20 }
  0x2e   : > { %s2394_s18 = scalar_lea.hbm (!%p1896_p7), %s2786_s14, 16384  ;;  %s2398_s10 = scalar_lea.hbm (!%p1896_p7), %s3836_s0, 32768 }
  0x2f   : > { %p2395_p10 = scmp.ne.s32.totalorder %s2786_s14, %s2394_s18  ;;  %p2399_p1 = scmp.lt.u32.totalorder %s2786_s14, %s3836_s0 }
  0x30   : > { %p2400_p4 = scmp.lt.u32.totalorder %s2398_s10, %s2394_s18  ;;  %p2402_p2 = scmp.lt.u32.totalorder %s2394_s18, %s2786_s14 }
  0x31   : > { %p2396_p11 = pnand %p2395_p10, %p2724_p3 }
  0x32   : > { %p2401_p5 = por %p2400_p4, %p2399_p1 }
  0x33   : > { %p2397_p0 = pneg %p2396_p11 }
  0x34   : > { %p2403_p7 = por %p2402_p2, %p2401_p5 }
  0x36   : > { %p2404_p9 = pnand %p2403_p7, %p2397_p0 }
  0x38   : > { %2407 = shalt.err (!%p2404_p9)
}
  0x39   : > { %s2408_s7 = scalar_lea.vmem %s2788_s20, 16384  ;;  %s2602_s26 = smov [#allocation2]  }
  0x3a   : > { %p2409_p10 = scmp.ne.s32.totalorder %s2788_s20, %s2408_s7  ;;  %s2412_s29 = sshll.u32 %s2602_s26, 4  ;;  %s2413_s29 = int_to_ptr.vmem [resolvable:$false] %s2412_s29 }
  0x3b   : > { %s2414_s9 = scalar_lea.vmem %s2413_s29, 32768  ;;  %p2415_p13 = scmp.lt.s32.totalorder %s2788_s20, %s2413_s29 }
  0x3c   : > { %p2410_p11 = pnand %p2409_p10, %p2724_p3  ;;  %p2416_p8 = scmp.lt.s32.totalorder %s2414_s9, %s2408_s7 }
  0x3e   : > { %p2411_p6 = pneg %p2410_p11  ;;  %p2417_p1 = por %p2416_p8, %p2415_p13 }
  0x40   : > { %p2418_p4 = pnand %p2417_p1, %p2411_p6 }
  0x42   : > { %2421 = shalt.err (!%p2418_p4)
}
  0x43   : > { %s3853_s18 = smov 512   ;;  %s2604_s17 = smov 32  }
  0x44   : > { %2265 = dma.hbm_to_vmem [thread:$0]  (%p2724_p3), %s2786_s14, 16384, %s2788_s20, %s2790_s24, %s3853_s18, %s3853_s18, %s2604_s17  }
  0x45   : > { %s2818_s10 = sand.u32 1, %s2568_s23   ;;  %s1958_s12 = sshll.u32 %s2596_s30, 14 }
  0x46   : > { %s1901_s16 = sshll.u32 %s2818_s10, 10  ;;  %s2825_s29 = scalar_lea.hbm %s3837_s1, %s1958_s12 }
  0x47   : > { %s238_s13 = scalar_lea.vmem [#allocation5], %s1901_s16  ;;  %s235_s20 = scalar_lea.sflag [#allocation6], %s2818_s10 }
  0x48   : > { %s246_s9 = sshll.u32 %s238_s13, 4  ;;  %s2422_s14 = scalar_lea.hbm %s2825_s29, 16384  ;;  %s2827_s9 = int_to_ptr.vmem [resolvable:$true] %s246_s9 }
  0x49   : > { %p2423_p3 = scmp.ne.s32.totalorder %s2825_s29, %s2422_s14  ;;  %s2426_s7 = scalar_lea.hbm %s3837_s1, 32768 }
  0x4a   : > { %p2427_p6 = scmp.lt.u32.totalorder %s2825_s29, %s3837_s1  ;;  %p2428_p9 = scmp.lt.u32.totalorder %s2426_s7, %s2422_s14 }
  0x4b   : > { %p2424_p8 = pnand %p2423_p3, %p2752_p12  ;;  %p2430_p5 = scmp.lt.u32.totalorder %s2422_s14, %s2825_s29 }
  0x4c   : > { %p2429_p0 = por %p2428_p9, %p2427_p6 }
  0x4d   : > { %p2425_p13 = pneg %p2424_p8 }
  0x4e   : > { %p2431_p2 = por %p2430_p5, %p2429_p0 }
  0x50   : > { %p2432_p7 = pnand %p2431_p2, %p2425_p13 }
  0x52   : > { %2435 = shalt.err (!%p2432_p7)
}
  0x53   : > { %s2436_s16 = scalar_lea.vmem %s2827_s9, 16384  ;;  %s2605_s18 = smov [#allocation5]  }
  0x54   : > { %p2437_p10 = scmp.ne.s32.totalorder %s2827_s9, %s2436_s16  ;;  %s2440_s13 = sshll.u32 %s2605_s18, 4  ;;  %s2441_s13 = int_to_ptr.vmem [resolvable:$false] %s2440_s13 }
  0x55   : > { %s2442_s24 = scalar_lea.vmem %s2441_s13, 32768  ;;  %p2443_p4 = scmp.lt.s32.totalorder %s2827_s9, %s2441_s13 }
  0x56   : > { %p2438_p11 = pnand %p2437_p10, %p2752_p12  ;;  %p2444_p3 = scmp.lt.s32.totalorder %s2442_s24, %s2436_s16 }
  0x58   : > { %p2439_p1 = pneg %p2438_p11  ;;  %p2445_p8 = por %p2444_p3, %p2443_p4 }
  0x5a   : > { %p2446_p6 = pnand %p2445_p8, %p2439_p1 }
  0x5c   : > { %2449 = shalt.err (!%p2446_p6)
}
  0x5d   : > { %s3872_s14 = smov 512   ;;  %264 = sbr.rel (!%p2752_p12) target bundleno = 106 (0x6a), region = 32 }
  0x5e   : > { %2266 = dma.hbm_to_vmem [thread:$0]  (%p2752_p12), %s2825_s29, 16384, %s2827_s9, %s235_s20, %s3872_s14, %s3872_s14, %s2604_s17  }
  0x5f   : > { %s1905_s7 = sshll.u32 (%p2752_p12), %s2818_s10, 7  ;;  %s1959_s12 = sshll.u32 (%p2752_p12), %s2596_s30, 4 }
  0x60   : > { %s2863_s18 = scalar_lea.vmem (%p2752_p12), %s3839_s3, %s1959_s12  ;;  %s268_s8 = scalar_lea.vmem (%p2752_p12), [#allocation7], %s1905_s7 }
  0x61   : > { %v284_v0 = vld [vmem:[%s2863_s18] sm:$0xff] (%p2752_p12)  ;;  %v286_v1 = vld [vmem:[%s2863_s18 + $0x8] sm:$0xff] (%p2752_p12) }
  0x62   : > { %v288_v2 = vld [vmem:[%s2863_s18 + $0x20] sm:$0xff] (%p2752_p12)  ;;  %285 = vst [vmem:[%s268_s8] sm:$0xff] (%p2752_p12), %v284_v0  ;;  %287 = vst [vmem:[%s268_s8 + $0x8] sm:$0xff] (%p2752_p12), %v286_v1  ;;  %v290_v3 = vld [vmem:[%s2863_s18 + $0x28] sm:$0xff] (%p2752_p12) }
  0x63   : > { %289 = vst [vmem:[%s268_s8 + $0x10] sm:$0xff] (%p2752_p12), %v288_v2  ;;  %v292_v4 = vld [vmem:[%s2863_s18 + $0x40] sm:$0xff] (%p2752_p12)  ;;  %v294_v5 = vld [vmem:[%s2863_s18 + $0x48] sm:$0xff] (%p2752_p12)  ;;  %291 = vst [vmem:[%s268_s8 + $0x18] sm:$0xff] (%p2752_p12), %v290_v3 }
  0x64   : > { %293 = vst [vmem:[%s268_s8 + $0x20] sm:$0xff] %v292_v4  ;;  %295 = vst [vmem:[%s268_s8 + $0x28] sm:$0xff] %v294_v5  ;;  %v296_v6 = vld [vmem:[%s2863_s18 + $0x60] sm:$0xff]  ;;  %v298_v7 = vld [vmem:[%s2863_s18 + $0x68] sm:$0xff] }
  0x65   : > { %v300_v8 = vld [vmem:[%s2863_s18 + $0x80] sm:$0xff]  ;;  %297 = vst [vmem:[%s268_s8 + $0x30] sm:$0xff] %v296_v6  ;;  %299 = vst [vmem:[%s268_s8 + $0x38] sm:$0xff] %v298_v7  ;;  %v302_v9 = vld [vmem:[%s2863_s18 + $0x88] sm:$0xff] }
  0x66   : > { %301 = vst [vmem:[%s268_s8 + $0x40] sm:$0xff] %v300_v8  ;;  %v304_v10 = vld [vmem:[%s2863_s18 + $0xa0] sm:$0xff]  ;;  %v306_v11 = vld [vmem:[%s2863_s18 + $0xa8] sm:$0xff]  ;;  %303 = vst [vmem:[%s268_s8 + $0x48] sm:$0xff] %v302_v9 }
  0x67   : > { %305 = vst [vmem:[%s268_s8 + $0x50] sm:$0xff] %v304_v10  ;;  %307 = vst [vmem:[%s268_s8 + $0x58] sm:$0xff] %v306_v11  ;;  %v308_v12 = vld [vmem:[%s2863_s18 + $0xc0] sm:$0xff]  ;;  %v310_v13 = vld [vmem:[%s2863_s18 + $0xc8] sm:$0xff] }
  0x68   : > { %v312_v14 = vld [vmem:[%s2863_s18 + $0xe0] sm:$0xff]  ;;  %309 = vst [vmem:[%s268_s8 + $0x60] sm:$0xff] %v308_v12  ;;  %311 = vst [vmem:[%s268_s8 + $0x68] sm:$0xff] %v310_v13  ;;  %v314_v15 = vld [vmem:[%s2863_s18 + $0xe8] sm:$0xff] }
  0x69   : > { %313 = vst [vmem:[%s268_s8 + $0x70] sm:$0xff] %v312_v14  ;;  %315 = vst [vmem:[%s268_s8 + $0x78] sm:$0xff] %v314_v15 }
  0x6a PF: > { %p1908_p12 = scmp.ge.s32.totalorder %s2600_s6, 1  ;;  %p328_p13 = scmp.lt.s32.totalorder %s2600_s6, 5 }
  0x6c   : > { %p329_p9 = pnand %p1908_p12, %p328_p13 }
  0x6e   : > { %332 = sbr.rel (%p329_p9) target bundleno = 628 (0x274), region = 59 }
  0x75   : > { %s334_s17 = sand.u32 1, %s2576_s25   ;;  %p3873_p0 = scmp.ne.s32.totalorder %s3862_s15, 0 }
  0x76   : > { %s1909_s10 = sshll.u32 %s334_s17, 10  ;;  %s335_s29 = scalar_lea.sflag [#allocation3], %s334_s17 }
  0x77   : > { %s2884_s9 = scalar_lea.vmem [#allocation2], %s1909_s10 }
  0x78   : > { %2535 = dma.done.wait (%p3873_p0), %s335_s29, 16384  }
  0x79   : > { %2537 = vsyncadd (%p3873_p0), %s335_s29, 4294950912  ;;  %s343_s20 = sand.u32 1, %s2564_s22   ;;  %p3874_p5 = scmp.ne.s32.totalorder %s3865_s11, 0 }
  0x7a   : > { %s1910_s13 = sshll.u32 %s343_s20, 10  ;;  %s344_s24 = scalar_lea.sflag [#allocation6], %s343_s20 }
  0x7b   : > { %s2891_s14 = scalar_lea.vmem [#allocation5], %s1910_s13 }
  0x7c   : > { %2539 = dma.done.wait (%p3874_p5), %s344_s24, 16384  }
  0x7d   : > { %2541 = vsyncadd (%p3874_p5), %s344_s24, 4294950912  ;;  %s1911_s7 = sshll.u32 %s343_s20, 7  ;;  %v2606_v16 = vmov 0.0   ;;  %s1913_s15 = sshll.u32 %s2584_s27, 5  ;;  %v544_v19 = vld [vmem:[%s2891_s14 + $0x8] sm:$0xff]  ;;  %v543_v26 = vld [vmem:[%s2891_s14] sm:$0xff] }
  0x7e   : > { %880 = vmatprep.mubr.f32.mxu0 %v2606_v16  ;;  %s2899_s12 = scalar_lea.vmem [#allocation7], %s1911_s7  ;;  %v548_v21 = vld [vmem:[%s2891_s14 + $0x28] sm:$0xff]  ;;  %v547_v27 = vld [vmem:[%s2891_s14 + $0x20] sm:$0xff]  ;;  %p2912_p2 = scmp.lt.s32.totalorder %s1913_s15, 63  ;;  %v546_v55 = vld [vmem:[%s2891_s14 + $0x18] sm:$0xff]  ;;  %vm719_vm0 = vcmask 523264  }
  0x7f   : > { %v704_v17 = vld [vmem:[%s2899_s12 + $0x8] sm:$0xff]  ;;  %v706_v18 = vld [vmem:[%s2899_s12 + $0x18] sm:$0xff]  ;;  %v703_v22 = vld [vmem:[%s2899_s12] sm:$0xff]  ;;  %v1977_v24 = vpack.c.bf16 %v548_v21, %v544_v19  ;;  %v1979_v29 = vpack.c.bf16 %v547_v27, %v543_v26  ;;  %s3530_s17 = sshll.u32 %s2588_s28, 1  ;;  %s396_s20 = sand.u32 1, %s2552_s19  }
  0x80   : > { %v1961_v20 = vpack.c.bf16 %v706_v18, %v704_v17  ;;  %v705_v23 = vld [vmem:[%s2899_s12 + $0x10] sm:$0xff]  ;;  %v708_v28 = vld [vmem:[%s2899_s12 + $0x28] sm:$0xff]  ;;  %v710_v30 = vld [vmem:[%s2899_s12 + $0x38] sm:$0xff]  ;;  %s3940_s15 = smov (!%p2912_p2, %s1913_s15), 63  ;;  %p409_p7 = scmp.lt.s32.totalorder %s3530_s17, 3 }
  0x81   : > { %v1963_v25 = vpack.c.bf16 %v705_v23, %v703_v22  ;;  %v707_v31 = vld [vmem:[%s2899_s12 + $0x20] sm:$0xff]  ;;  %v709_v32 = vld [vmem:[%s2899_s12 + $0x30] sm:$0xff]  ;;  %1978 = vmatprep.subr.bf16.mxu1 %v1977_v24  ;;  %v1965_v33 = vpack.c.bf16 %v710_v30, %v708_v28  ;;  %v712_v35 = vld [vmem:[%s2899_s12 + $0x48] sm:$0xff]  ;;  %s1914_s26 = sshll.u32 %s3940_s15, 3  ;;  %s1912_s13 = sshll.u32 %s396_s20, 9 }
  0x82   : > { %1962 = vmatprep.subr.bf16.mxu0 %v1961_v20  ;;  %v1967_v34 = vpack.c.bf16 %v709_v32, %v707_v31  ;;  %v714_v36 = vld [vmem:[%s2899_s12 + $0x58] sm:$0xff]  ;;  %v552_v37 = vld [vmem:[%s2891_s14 + $0x48] sm:$0xff]  ;;  %1980 = vmatpush1.bf16.xpose.msra.mxu1 %v1979_v29  ;;  %v711_v40 = vld [vmem:[%s2899_s12 + $0x40] sm:$0xff]  ;;  %s2942_s8 = scalar_lea.vmem %s3838_s2, %s1914_s26  ;;  %s3568_s24 = scalar_lea.vmem [#allocation8], %s1912_s13 }
  0x83   : > { %1964 = vmatpush1.bf16.msra.mxu0 %v1963_v25  ;;  %v1969_v38 = vpack.c.bf16 %v714_v36, %v712_v35  ;;  %v556_v39 = vld [vmem:[%s2891_s14 + $0x68] sm:$0xff]  ;;  %v713_v41 = vld [vmem:[%s2899_s12 + $0x50] sm:$0xff]  ;;  %v551_v43 = vld [vmem:[%s2891_s14 + $0x40] sm:$0xff]  ;;  %s410_s28 = scalar_select %p409_p7, %s3530_s17, 3 }
  0x84   : > { %1966 = vmatprep.subr.bf16.mxu0 %v1965_v33  ;;  %v1981_v42 = vpack.c.bf16 %v556_v39, %v552_v37  ;;  %v555_v44 = vld [vmem:[%s2891_s14 + $0x60] sm:$0xff]  ;;  %v716_v45 = vld [vmem:[%s2899_s12 + $0x68] sm:$0xff]  ;;  %v718_v46 = vld [vmem:[%s2899_s12 + $0x78] sm:$0xff]  ;;  %v1971_v47 = vpack.c.bf16 %v713_v41, %v711_v40  ;;  %s1744_s15 = sshll.u32 %s3568_s24, 4  ;;  %s3760_s16 = scalar_lea.sflag [#allocation4], %s396_s20  ;;  %s3753_s15 = int_to_ptr.vmem [resolvable:$true] %s1744_s15 }
  0x85   : > { %v560_v48 = vld [vmem:[%s2891_s14 + $0x88] sm:$0xff]  ;;  %v1983_v50 = vpack.c.bf16 %v555_v44, %v551_v43  ;;  %v1973_v51 = vpack.c.bf16 %v718_v46, %v716_v45  ;;  %v715_v52 = vld [vmem:[%s2899_s12 + $0x60] sm:$0xff]  ;;  %v717_v53 = vld [vmem:[%s2899_s12 + $0x70] sm:$0xff]  ;;  %s2450_s18 = scalar_lea.vmem %s3753_s15, 8192  ;;  %p3910_p11 = scmp.ne.s32.totalorder %s3868_s21, 0 }
  0x86   : > { %1982 = vmatprep.subr.bf16.mxu1 %v1981_v42  ;;  %v564_v49 = vld [vmem:[%s2891_s14 + $0xa8] sm:$0xff]  ;;  %v550_v56 = vld [vmem:[%s2891_s14 + $0x38] sm:$0xff]  ;;  %v1975_v57 = vpack.c.bf16 %v717_v53, %v715_v52  ;;  %v559_v59 = vld [vmem:[%s2891_s14 + $0x80] sm:$0xff]  ;;  %p2451_p10 = scmp.ne.s32.totalorder %s3753_s15, %s2450_s18 }
  0x87   : > { %1968 = vmatpush1.bf16.msra.mxu0 %v1967_v34  ;;  %v1985_v54 = vpack.c.bf16 %v564_v49, %v560_v48  ;;  %v2944_v58 = vpack.c.bf16 %v550_v56, %v546_v55  ;;  %v563_v60 = vld [vmem:[%s2891_s14 + $0xa0] sm:$0xff]  ;;  %v568_v61 = vld [vmem:[%s2891_s14 + $0xc8] sm:$0xff]  ;;  %v545_v1 = vld [vmem:[%s2891_s14 + $0x10] sm:$0xff] }
  0x88   : > { %1970 = vmatprep.subr.bf16.mxu0 %v1969_v38  ;;  %v572_v62 = vld [vmem:[%s2891_s14 + $0xe8] sm:$0xff]  ;;  %v671_v63 = vld [vmem:[%s2942_s8] sm:$0xff]  ;;  %v1987_v0 = vpack.c.bf16 %v563_v60, %v559_v59  ;;  %v549_v2 = vld [vmem:[%s2891_s14 + $0x30] sm:$0xff]  ;;  %p2452_p1 = pnand %p2451_p10, %p3910_p11 }
  0x89   : > { %v1989_v3 = vpack.c.bf16 %v572_v62, %v568_v61  ;;  %v554_v4 = vld [vmem:[%s2891_s14 + $0x58] sm:$0xff]  ;;  %v672_v6 = vld [vmem:[%s2942_s8 + $0x8] sm:$0xff]  ;;  %v2959_v7 = vpack.c.bf16 %v549_v2, %v545_v1  ;;  %v567_v8 = vld [vmem:[%s2891_s14 + $0xc0] sm:$0xff] }
  0x8a   : > { %1984 = vmatpush1.bf16.xpose.msra.mxu1 %v1983_v50  ;;  %v558_v5 = vld [vmem:[%s2891_s14 + $0x78] sm:$0xff]  ;;  %v571_v9 = vld [vmem:[%s2891_s14 + $0xe0] sm:$0xff]  ;;  %v576_v11 = vld [vmem:[%s2891_s14 + $0x108] sm:$0xff]  ;;  %p2453_p4 = pneg %p2452_p1 }
  0x8b   : > { %1972 = vmatpush1.bf16.msra.mxu0 %v1971_v47  ;;  %1986 = vmatprep.subr.bf16.mxu1 %v1985_v54  ;;  %v2963_v10 = vpack.c.bf16 %v558_v5, %v554_v4  ;;  %v580_v12 = vld [vmem:[%s2891_s14 + $0x128] sm:$0xff]  ;;  %v673_v13 = vld [vmem:[%s2942_s8 + $0x10] sm:$0xff]  ;;  %v1991_v14 = vpack.c.bf16 %v571_v9, %v567_v8  ;;  %v562_v19 = vld [vmem:[%s2891_s14 + $0x98] sm:$0xff] }
  0x8c   : > { %1974 = vmatprep.subr.bf16.mxu0 %v1973_v51  ;;  %v553_v15 = vld [vmem:[%s2891_s14 + $0x50] sm:$0xff]  ;;  %v1993_v18 = vpack.c.bf16 %v580_v12, %v576_v11  ;;  %v566_v20 = vld [vmem:[%s2891_s14 + $0xb8] sm:$0xff]  ;;  %v575_v23 = vld [vmem:[%s2891_s14 + $0x100] sm:$0xff] }
  0x8d   : > { %v557_v17 = vld [vmem:[%s2891_s14 + $0x70] sm:$0xff]  ;;  %v674_v21 = vld [vmem:[%s2942_s8 + $0x18] sm:$0xff]  ;;  %v579_v24 = vld [vmem:[%s2891_s14 + $0x120] sm:$0xff]  ;;  %v2983_v25 = vpack.c.bf16 %v566_v20, %v562_v19 }
  0x8e   : > { %v2979_v22 = vpack.c.bf16 %v557_v17, %v553_v15  ;;  %v584_v26 = vld [vmem:[%s2891_s14 + $0x148] sm:$0xff]  ;;  %v675_v28 = vld [vmem:[%s2942_s8 + $0x20] sm:$0xff]  ;;  %v1995_v29 = vpack.c.bf16 %v579_v24, %v575_v23  ;;  %v561_v30 = vld [vmem:[%s2891_s14 + $0x90] sm:$0xff] }
  0x8f   : > { %1976 = vmatpush1.bf16.msra.mxu0 %v1975_v57  ;;  %v588_v27 = vld [vmem:[%s2891_s14 + $0x168] sm:$0xff]  ;;  %v565_v31 = vld [vmem:[%s2891_s14 + $0xb0] sm:$0xff]  ;;  %v570_v33 = vld [vmem:[%s2891_s14 + $0xd8] sm:$0xff] }
  0x90   : > { %2042 = vmatprep.subr.bf16.mxu0 %v2944_v58  ;;  %v1997_v32 = vpack.c.bf16 %v588_v27, %v584_v26  ;;  %v574_v34 = vld [vmem:[%s2891_s14 + $0xf8] sm:$0xff]  ;;  %v676_v35 = vld [vmem:[%s2942_s8 + $0x28] sm:$0xff]  ;;  %v2999_v36 = vpack.c.bf16 %v565_v31, %v561_v30  ;;  %v583_v37 = vld [vmem:[%s2891_s14 + $0x140] sm:$0xff] }
  0x91   : > { %v587_v38 = vld [vmem:[%s2891_s14 + $0x160] sm:$0xff]  ;;  %v3003_v39 = vpack.c.bf16 %v574_v34, %v570_v33  ;;  %v592_v40 = vld [vmem:[%s2891_s14 + $0x188] sm:$0xff]  ;;  %v677_v42 = vld [vmem:[%s2942_s8 + $0x30] sm:$0xff] }
  0x92   : > { %1916 = vmatmul.mubr.msk.f32.vlgmr.msra.gmra.mrb[0].mxu0 %vm719_vm0, %v671_v63  ;;  %1988 = vmatpush1.bf16.xpose.msra.mxu1 %v1987_v0  ;;  %v596_v41 = vld [vmem:[%s2891_s14 + $0x1a8] sm:$0xff]  ;;  %v1999_v43 = vpack.c.bf16 %v587_v38, %v583_v37  ;;  %v569_v44 = vld [vmem:[%s2891_s14 + $0xd0] sm:$0xff]  ;;  %v578_v47 = vld [vmem:[%s2891_s14 + $0x118] sm:$0xff] }
  0x93   : > { %886 = vmatprep.mubr.f32.mxu0 %v2606_v16  ;;  %1990 = vmatprep.subr.bf16.mxu1 %v1989_v3  ;;  %v573_v45 = vld [vmem:[%s2891_s14 + $0xf0] sm:$0xff]  ;;  %v2001_v46 = vpack.c.bf16 %v596_v41, %v592_v40  ;;  %v582_v48 = vld [vmem:[%s2891_s14 + $0x138] sm:$0xff]  ;;  %v591_v51 = vld [vmem:[%s2891_s14 + $0x180] sm:$0xff] }
  0x94   : > { %v678_v49 = vld [vmem:[%s2942_s8 + $0x38] sm:$0xff]  ;;  %v3019_v50 = vpack.c.bf16 %v573_v45, %v569_v44  ;;  %v595_v52 = vld [vmem:[%s2891_s14 + $0x1a0] sm:$0xff]  ;;  %v3023_v53 = vpack.c.bf16 %v582_v48, %v578_v47  ;;  %v600_v54 = vld [vmem:[%s2891_s14 + $0x1c8] sm:$0xff] }
  0x95   : > { %v604_v55 = vld [vmem:[%s2891_s14 + $0x1e8] sm:$0xff]  ;;  %v679_v56 = vld [vmem:[%s2942_s8 + $0x40] sm:$0xff]  ;;  %v2003_v57 = vpack.c.bf16 %v595_v52, %v591_v51  ;;  %v577_v59 = vld [vmem:[%s2891_s14 + $0x110] sm:$0xff] }
  0x96   : > { %1917 = vmatmul.mubr.msk.f32.gmra.mrb[2].mxu0 %vm719_vm0, %v672_v6  ;;  %v581_v60 = vld [vmem:[%s2891_s14 + $0x130] sm:$0xff]  ;;  %v2005_v61 = vpack.c.bf16 %v604_v55, %v600_v54  ;;  %v586_v62 = vld [vmem:[%s2891_s14 + $0x158] sm:$0xff]  ;;  %v680_v0 = vld [vmem:[%s2942_s8 + $0x48] sm:$0xff] }
  0x97   : > { %892 = vmatprep.mubr.f32.mxu0 %v2606_v16  ;;  %v590_v63 = vld [vmem:[%s2891_s14 + $0x178] sm:$0xff]  ;;  %v3039_v1 = vpack.c.bf16 %v581_v60, %v577_v59  ;;  %v599_v2 = vld [vmem:[%s2891_s14 + $0x1c0] sm:$0xff]  ;;  %v416_v5 = vld [vmem:[%s2884_s9 + $0x8] sm:$0xff] }
  0x98   : > { %2044 = vmatpush1.bf16.xpose.msra.mxu0 %v2959_v7  ;;  %v603_v3 = vld [vmem:[%s2891_s14 + $0x1e0] sm:$0xff]  ;;  %v3043_v4 = vpack.c.bf16 %v590_v63, %v586_v62  ;;  %v608_v6 = vld [vmem:[%s2891_s14 + $0x208] sm:$0xff]  ;;  %1137 = vmatprep.mubr.f32.mxu1 %v416_v5  ;;  %v681_v9 = vld [vmem:[%s2942_s8 + $0x50] sm:$0xff] }
  0x99   : > { %2046 = vmatprep.subr.bf16.mxu0 %v2963_v10  ;;  %v612_v8 = vld [vmem:[%s2891_s14 + $0x228] sm:$0xff]  ;;  %v2007_v11 = vpack.c.bf16 %v603_v3, %v599_v2  ;;  %v585_v12 = vld [vmem:[%s2891_s14 + $0x150] sm:$0xff]  ;;  %v594_v15 = vld [vmem:[%s2891_s14 + $0x198] sm:$0xff] }
  0x9a   : > { %1918 = vmatmul.mubr.msk.f32.gmra.mrb[4].mxu0 %vm719_vm0, %v673_v13  ;;  %1992 = vmatpush1.bf16.xpose.msra.mxu1 %v1991_v14  ;;  %v589_v13 = vld [vmem:[%s2891_s14 + $0x170] sm:$0xff]  ;;  %v2009_v14 = vpack.c.bf16 %v612_v8, %v608_v6  ;;  %v598_v17 = vld [vmem:[%s2891_s14 + $0x1b8] sm:$0xff]  ;;  %v607_v20 = vld [vmem:[%s2891_s14 + $0x200] sm:$0xff] }
  0x9b   : > { %898 = vmatprep.mubr.f32.mxu0 %v2606_v16  ;;  %1994 = vmatprep.subr.bf16.mxu1 %v1993_v18  ;;  %v682_v18 = vld [vmem:[%s2942_s8 + $0x58] sm:$0xff]  ;;  %v3060_v19 = vpack.c.bf16 %v589_v13, %v585_v12  ;;  %v3064_v23 = vpack.c.bf16 %v598_v17, %v594_v15  ;;  %v616_v24 = vld [vmem:[%s2891_s14 + $0x248] sm:$0xff]  ;;  %v683_v27 = vld [vmem:[%s2942_s8 + $0x60] sm:$0xff] }
  0x9c   : > { %v620_v26 = vld [vmem:[%s2891_s14 + $0x268] sm:$0xff]  ;;  %v597_v30 = vld [vmem:[%s2891_s14 + $0x1b0] sm:$0xff]  ;;  %v606_v33 = vld [vmem:[%s2891_s14 + $0x1f8] sm:$0xff] }
  0x9d   : > { %v2013_v31 = vpack.c.bf16 %v620_v26, %v616_v24  ;;  %v684_v34 = vld [vmem:[%s2942_s8 + $0x68] sm:$0xff]  ;;  %v615_v37 = vld [vmem:[%s2891_s14 + $0x240] sm:$0xff]  ;;  %v601_v45 = vld [vmem:[%s2891_s14 + $0x1d0] sm:$0xff] }
  0x9e   : > { %1919 = vmatmul.mubr.msk.f32.gmra.mrb[6].mxu0 %vm719_vm0, %v674_v21  ;;  %v611_v21 = vld [vmem:[%s2891_s14 + $0x220] sm:$0xff]  ;;  %v624_v41 = vld [vmem:[%s2891_s14 + $0x288] sm:$0xff]  ;;  %v610_v48 = vld [vmem:[%s2891_s14 + $0x218] sm:$0xff] }
  0x9f   : > { %904 = vmatprep.mubr.f32.mxu0 %v2606_v16  ;;  %v619_v38 = vld [vmem:[%s2891_s14 + $0x260] sm:$0xff]  ;;  %v686_v51 = vld [vmem:[%s2942_s8 + $0x78] sm:$0xff]  ;;  %v636_v59 = vld [vmem:[%s2891_s14 + $0x2e8] sm:$0xff] }
  0xa0   : > { %2048 = vmatpush1.bf16.xpose.msra.mxu0 %v2979_v22  ;;  %v2015_v44 = vpack.c.bf16 %v619_v38, %v615_v37  ;;  %v623_v54 = vld [vmem:[%s2891_s14 + $0x280] sm:$0xff]  ;;  %v609_v62 = vld [vmem:[%s2891_s14 + $0x210] sm:$0xff]  ;;  %v618_v2 = vld [vmem:[%s2891_s14 + $0x258] sm:$0xff] }
  0xa1   : > { %2050 = vmatprep.subr.bf16.mxu0 %v2983_v25  ;;  %v627_v55 = vld [vmem:[%s2891_s14 + $0x2a0] sm:$0xff]  ;;  %v613_v63 = vld [vmem:[%s2891_s14 + $0x230] sm:$0xff]  ;;  %v622_v3 = vld [vmem:[%s2891_s14 + $0x278] sm:$0xff] }
  0xa2   : > { %1920 = vmatmul.mubr.msk.f32.gmra.mrb[8].mxu0 %vm719_vm0, %v675_v28  ;;  %1996 = vmatpush1.bf16.xpose.msra.mxu1 %v1995_v29  ;;  %v2011_v28 = vpack.c.bf16 %v611_v21, %v607_v20  ;;  %v593_v29 = vld [vmem:[%s2891_s14 + $0x190] sm:$0xff]  ;;  %v687_v60 = vld [vmem:[%s2942_s8 + $0x80] sm:$0xff]  ;;  %v688_v5 = vld [vmem:[%s2942_s8 + $0x88] sm:$0xff]  ;;  %v3120_v6 = vpack.c.bf16 %v613_v63, %v609_v62 }
  0xa3   : > { %910 = vmatprep.mubr.f32.mxu0 %v2606_v16  ;;  %1998 = vmatprep.subr.bf16.mxu1 %v1997_v32  ;;  %v602_v32 = vld [vmem:[%s2891_s14 + $0x1d8] sm:$0xff]  ;;  %v631_v8 = vld [vmem:[%s2891_s14 + $0x2c0] sm:$0xff]  ;;  %v640_v12 = vld [vmem:[%s2891_s14 + $0x308] sm:$0xff] }
  0xa4   : > { %v3084_v40 = vpack.c.bf16 %v606_v33, %v602_v32  ;;  %v644_v13 = vld [vmem:[%s2891_s14 + $0x328] sm:$0xff]  ;;  %v617_v17 = vld [vmem:[%s2891_s14 + $0x250] sm:$0xff]  ;;  %v626_v21 = vld [vmem:[%s2891_s14 + $0x298] sm:$0xff] }
  0xa5   : > { %v2025_v20 = vpack.c.bf16 %v644_v13, %v640_v12  ;;  %v630_v24 = vld [vmem:[%s2891_s14 + $0x2b8] sm:$0xff]  ;;  %v652_v32 = vld [vmem:[%s2891_s14 + $0x368] sm:$0xff]  ;;  %v691_v33 = vld [vmem:[%s2942_s8 + $0xa0] sm:$0xff] }
  0xa6   : > { %1921 = vmatmul.mubr.msk.f32.gmra.mrb[10].mxu0 %vm719_vm0, %v676_v35  ;;  %v3080_v35 = vpack.c.bf16 %v597_v30, %v593_v29  ;;  %v690_v26 = vld [vmem:[%s2942_s8 + $0x98] sm:$0xff]  ;;  %v643_v29 = vld [vmem:[%s2891_s14 + $0x320] sm:$0xff]  ;;  %v3144_v30 = vpack.c.bf16 %v630_v24, %v626_v21  ;;  %v625_v37 = vld [vmem:[%s2891_s14 + $0x290] sm:$0xff] }
  0xa7   : > { %916 = vmatprep.mubr.f32.mxu0 %v2606_v16  ;;  %v629_v38 = vld [vmem:[%s2891_s14 + $0x2b0] sm:$0xff]  ;;  %v646_v62 = vld [vmem:[%s2891_s14 + $0x338] sm:$0xff]  ;;  %v695_v12 = vld [vmem:[%s2942_s8 + $0xc0] sm:$0xff] }
  0xa8   : > { %2052 = vmatpush1.bf16.xpose.msra.mxu0 %v2999_v36  ;;  %v694_v63 = vld [vmem:[%s2942_s8 + $0xb8] sm:$0xff]  ;;  %v696_v21 = vld [vmem:[%s2942_s8 + $0xc8] sm:$0xff] }
  0xa9   : > { %2054 = vmatprep.subr.bf16.mxu0 %v3003_v39 }
  0xaa   : > { %1922 = vmatmul.mubr.msk.f32.gmra.mrb[12].mxu0 %vm719_vm0, %v677_v42  ;;  %2000 = vmatpush1.bf16.xpose.msra.mxu1 %v1999_v43  ;;  %v628_v42 = vld [vmem:[%s2891_s14 + $0x2a8] sm:$0xff]  ;;  %v685_v43 = vld [vmem:[%s2942_s8 + $0x70] sm:$0xff] }
  0xab   : > { %922 = vmatprep.mubr.f32.mxu0 %v2606_v16  ;;  %2002 = vmatprep.subr.bf16.mxu1 %v2001_v46  ;;  %v605_v46 = vld [vmem:[%s2891_s14 + $0x1f0] sm:$0xff]  ;;  %v2017_v47 = vpack.c.bf16 %v628_v42, %v624_v41  ;;  %v634_v42 = vld [vmem:[%s2891_s14 + $0x2d8] sm:$0xff] }
  0xac   : > { %v3100_v52 = vpack.c.bf16 %v605_v46, %v601_v45  ;;  %v3160_v45 = vpack.c.bf16 %v629_v38, %v625_v37  ;;  %v647_v46 = vld [vmem:[%s2891_s14 + $0x340] sm:$0xff]  ;;  %v658_v37 = vld [vmem:[%s2891_s14 + $0x398] sm:$0xff] }
  0xad   : > { %v662_v38 = vld [vmem:[%s2891_s14 + $0x3b8] sm:$0xff] }
  0xae   : > { %1923 = vmatmul.mubr.msk.f32.gmra.mrb[14].mxu0 %vm719_vm0, %v678_v49  ;;  %v614_v49 = vld [vmem:[%s2891_s14 + $0x238] sm:$0xff] }
  0xaf   : > { %928 = vmatprep.mubr.f32.mxu0 %v2606_v16 }
  0xb0   : > { %2056 = vmatpush1.bf16.xpose.msra.mxu0 %v3019_v50 }
  0xb1   : > { %2058 = vmatprep.subr.bf16.mxu0 %v3023_v53 }
  0xb2   : > { %1924 = vmatmul.mubr.msk.f32.gmra.mrb[16].mxu0 %vm719_vm0, %v679_v56  ;;  %2004 = vmatpush1.bf16.xpose.msra.mxu1 %v2003_v57  ;;  %v3104_v56 = vpack.c.bf16 %v614_v49, %v610_v48  ;;  %v632_v57 = vld [vmem:[%s2891_s14 + $0x2c8] sm:$0xff] }
  0xb3   : > { %934 = vmatprep.mubr.f32.mxu0 %v2606_v16  ;;  %2006 = vmatprep.subr.bf16.mxu1 %v2005_v61  ;;  %v2019_v61 = vpack.c.bf16 %v627_v55, %v623_v54  ;;  %v656_v49 = vld [vmem:[%s2891_s14 + $0x388] sm:$0xff]  ;;  %v693_v54 = vld [vmem:[%s2942_s8 + $0xb0] sm:$0xff] }
  0xb6   : > { %1925 = vmatmul.mubr.msk.f32.gmra.mrb[18].mxu0 %vm719_vm0, %v680_v0  ;;  %v2021_v0 = vpack.c.bf16 %v636_v59, %v632_v57  ;;  %v633_v57 = vld [vmem:[%s2891_s14 + $0x2d0] sm:$0xff] }
  0xb7   : > { %940 = vmatprep.mubr.f32.mxu0 %v2606_v16  ;;  %v637_v59 = vld [vmem:[%s2891_s14 + $0x2f0] sm:$0xff] }
  0xb8   : > { %2060 = vmatpush1.bf16.xpose.msra.mxu0 %v3039_v1 }
  0xb9   : > { %2062 = vmatprep.subr.bf16.mxu0 %v3043_v4 }
  0xba   : > { %1926 = vmatmul.mubr.msk.f32.gmra.mrb[20].mxu0 %vm719_vm0, %v681_v9  ;;  %2008 = vmatpush1.bf16.xpose.msra.mxu1 %v2007_v11  ;;  %v635_v9 = vld [vmem:[%s2891_s14 + $0x2e0] sm:$0xff]  ;;  %v3124_v11 = vpack.c.bf16 %v622_v3, %v618_v2 }
  0xbb   : > { %946 = vmatprep.mubr.f32.mxu0 %v2606_v16  ;;  %2010 = vmatprep.subr.bf16.mxu1 %v2009_v14  ;;  %v689_v14 = vld [vmem:[%s2942_s8 + $0x90] sm:$0xff]  ;;  %v2023_v15 = vpack.c.bf16 %v635_v9, %v631_v8  ;;  %v655_v2 = vld [vmem:[%s2891_s14 + $0x380] sm:$0xff]  ;;  %v664_v8 = vld [vmem:[%s2891_s14 + $0x3c8] sm:$0xff] }
  0xbc   : > { %v659_v3 = vld [vmem:[%s2891_s14 + $0x3a0] sm:$0xff]  ;;  %v668_v9 = vld [vmem:[%s2891_s14 + $0x3e8] sm:$0xff] }
  0xbd   : > { %v2035_v13 = vpack.c.bf16 %v659_v3, %v655_v2  ;;  %v669_v2 = vld [vmem:[%s2891_s14 + $0x3f0] sm:$0xff]  ;;  %v702_v3 = vld [vmem:[%s2942_s8 + $0xf8] sm:$0xff] }
  0xbe   : > { %1927 = vmatmul.mubr.msk.f32.gmra.mrb[22].mxu0 %vm719_vm0, %v682_v18  ;;  %v621_v18 = vld [vmem:[%s2891_s14 + $0x270] sm:$0xff] }
  0xbf   : > { %952 = vmatprep.mubr.f32.mxu0 %v2606_v16 }
  0xc0   : > { %2064 = vmatpush1.bf16.xpose.msra.mxu0 %v3060_v19 }
  0xc1   : > { %2066 = vmatprep.subr.bf16.mxu0 %v3064_v23 }
  0xc2   : > { %1928 = vmatmul.mubr.msk.f32.gmra.mrb[24].mxu0 %vm719_vm0, %v683_v27  ;;  %2012 = vmatpush1.bf16.xpose.msra.mxu1 %v2011_v28  ;;  %v3140_v27 = vpack.c.bf16 %v621_v18, %v617_v17  ;;  %v639_v28 = vld [vmem:[%s2891_s14 + $0x300] sm:$0xff]  ;;  %v2037_v17 = vpack.c.bf16 %v668_v9, %v664_v8  ;;  %v650_v18 = vld [vmem:[%s2891_s14 + $0x358] sm:$0xff] }
  0xc3   : > { %958 = vmatprep.mubr.f32.mxu0 %v2606_v16  ;;  %2014 = vmatprep.subr.bf16.mxu1 %v2013_v31  ;;  %v648_v31 = vld [vmem:[%s2891_s14 + $0x348] sm:$0xff]  ;;  %v427_v8 = vld [vmem:[%s2884_s9 + $0x60] sm:$0xff] }
  0xc4   : > { %v2029_v41 = vpack.c.bf16 %v652_v32, %v648_v31  ;;  %v697_v31 = vld [vmem:[%s2942_s8 + $0xd0] sm:$0xff] }
  0xc6   : > { %1929 = vmatmul.mubr.msk.f32.gmra.mrb[26].mxu0 %vm719_vm0, %v684_v34  ;;  %v2027_v34 = vpack.c.bf16 %v643_v29, %v639_v28  ;;  %v667_v28 = vld [vmem:[%s2891_s14 + $0x3e0] sm:$0xff] }
  0xc7   : > { %964 = vmatprep.mubr.f32.mxu0 %v2606_v16 }
  0xc8   : > { %2068 = vmatpush1.bf16.xpose.msra.mxu0 %v3080_v35 }
  0xc9   : > { %2070 = vmatprep.subr.bf16.mxu0 %v3084_v40 }
  0xca   : > { %1930 = vmatmul.mubr.msk.f32.gmra.mrb[28].mxu0 %vm719_vm0, %v685_v43  ;;  %2016 = vmatpush1.bf16.xpose.msra.mxu1 %v2015_v44  ;;  %v638_v43 = vld [vmem:[%s2891_s14 + $0x2f8] sm:$0xff]  ;;  %v692_v44 = vld [vmem:[%s2942_s8 + $0xa8] sm:$0xff] }
  0xcb   : > { %970 = vmatprep.mubr.f32.mxu0 %v2606_v16  ;;  %2018 = vmatprep.subr.bf16.mxu1 %v2017_v47  ;;  %v651_v47 = vld [vmem:[%s2891_s14 + $0x360] sm:$0xff]  ;;  %v3164_v48 = vpack.c.bf16 %v638_v43, %v634_v42  ;;  %v3221_v43 = vpack.c.bf16 %v662_v38, %v658_v37  ;;  %v433_v37 = vld [vmem:[%s2884_s9 + $0x90] sm:$0xff]  ;;  %v456_v38 = vld [vmem:[%s2884_s9 + $0x148] sm:$0xff] }
  0xcc   : > { %v2031_v55 = vpack.c.bf16 %v651_v47, %v647_v46  ;;  %v415_v46 = vld [vmem:[%s2884_s9] sm:$0xff]  ;;  %v420_v47 = vld [vmem:[%s2884_s9 + $0x28] sm:$0xff] }
  0xce   : > { %1931 = vmatmul.mubr.msk.f32.gmra.mrb[30].mxu0 %vm719_vm0, %v686_v51  ;;  %v660_v51 = vld [vmem:[%s2891_s14 + $0x3a8] sm:$0xff] }
  0xcf   : > { %976 = vmatprep.mubr.f32.mxu0 %v2606_v16 }
  0xd0   : > { %2072 = vmatpush1.bf16.xpose.msra.mxu0 %v3100_v52 }
  0xd1   : > { %2074 = vmatprep.subr.bf16.mxu0 %v3104_v56 }
  0xd2   : > { %1932 = vmatmul.mubr.msk.f32.gmra.mrb[32].mxu0 %vm719_vm0, %v687_v60  ;;  %2020 = vmatpush1.bf16.xpose.msra.mxu1 %v2019_v61  ;;  %v2033_v60 = vpack.c.bf16 %v660_v51, %v656_v49  ;;  %v642_v61 = vld [vmem:[%s2891_s14 + $0x318] sm:$0xff]  ;;  %v657_v49 = vld [vmem:[%s2891_s14 + $0x390] sm:$0xff] }
  0xd3   : > { %982 = vmatprep.mubr.f32.mxu0 %v2606_v16  ;;  %2022 = vmatprep.subr.bf16.mxu1 %v2021_v0  ;;  %v3180_v0 = vpack.c.bf16 %v637_v59, %v633_v57  ;;  %v661_v51 = vld [vmem:[%s2891_s14 + $0x3b0] sm:$0xff]  ;;  %v419_v57 = vld [vmem:[%s2884_s9 + $0x20] sm:$0xff] }
  0xd4   : > { %v3239_v59 = vpack.c.bf16 %v661_v51, %v657_v49  ;;  %v441_v49 = vld [vmem:[%s2884_s9 + $0xd0] sm:$0xff]  ;;  %v464_v51 = vld [vmem:[%s2884_s9 + $0x188] sm:$0xff] }
  0xd6   : > { %1933 = vmatmul.mubr.msk.f32.gmra.mrb[34].mxu0 %vm719_vm0, %v688_v5  ;;  %v3184_v5 = vpack.c.bf16 %v646_v62, %v642_v61  ;;  %v701_v62 = vld [vmem:[%s2942_s8 + $0xf0] sm:$0xff] }
  0xd7   : > { %988 = vmatprep.mubr.f32.mxu0 %v2606_v16 }
  0xd8   : > { %2076 = vmatpush1.bf16.xpose.msra.mxu0 %v3120_v6 }
  0xd9   : > { %2078 = vmatprep.subr.bf16.mxu0 %v3124_v11 }
  0xda   : > { %1934 = vmatmul.mubr.msk.f32.gmra.mrb[36].mxu0 %vm719_vm0, %v689_v14  ;;  %2024 = vmatpush1.bf16.xpose.msra.mxu1 %v2023_v15  ;;  %v641_v14 = vld [vmem:[%s2891_s14 + $0x310] sm:$0xff] }
  0xdb   : > { %994 = vmatprep.mubr.f32.mxu0 %v2606_v16  ;;  %2026 = vmatprep.subr.bf16.mxu1 %v2025_v20  ;;  %v645_v15 = vld [vmem:[%s2891_s14 + $0x330] sm:$0xff]  ;;  %v654_v20 = vld [vmem:[%s2891_s14 + $0x378] sm:$0xff] }
  0xdc   : > { %v3200_v24 = vpack.c.bf16 %v645_v15, %v641_v14  ;;  %v3204_v29 = vpack.c.bf16 %v654_v20, %v650_v18  ;;  %v435_v14 = vld [vmem:[%s2884_s9 + $0xa0] sm:$0xff]  ;;  %v417_v15 = vld [vmem:[%s2884_s9 + $0x10] sm:$0xff] }
  0xdd   : > { %v439_v18 = vld [vmem:[%s2884_s9 + $0xc0] sm:$0xff]  ;;  %v421_v20 = vld [vmem:[%s2884_s9 + $0x30] sm:$0xff] }
  0xde   : > { %1935 = vmatmul.mubr.msk.f32.gmra.mrb[38].mxu0 %vm719_vm0, %v690_v26  ;;  %v663_v26 = vld [vmem:[%s2891_s14 + $0x3c0] sm:$0xff] }
  0xdf   : > { %1000 = vmatprep.mubr.f32.mxu0 %v2606_v16  ;;  %v2039_v32 = vpack.c.bf16 %v667_v28, %v663_v26  ;;  %v425_v26 = vld [vmem:[%s2884_s9 + $0x50] sm:$0xff]  ;;  %v448_v28 = vld [vmem:[%s2884_s9 + $0x108] sm:$0xff] }
  0xe0   : > { %2080 = vmatpush1.bf16.xpose.msra.mxu0 %v3140_v27 }
  0xe1   : > { %2082 = vmatprep.subr.bf16.mxu0 %v3144_v30 }
  0xe2   : > { %1936 = vmatmul.mubr.msk.f32.gmra.mrb[40].mxu0 %vm719_vm0, %v691_v33  ;;  %2028 = vmatpush1.bf16.xpose.msra.mxu1 %v2027_v34  ;;  %v649_v33 = vld [vmem:[%s2891_s14 + $0x350] sm:$0xff] }
  0xe3   : > { %1006 = vmatprep.mubr.f32.mxu0 %v2606_v16  ;;  %2030 = vmatprep.subr.bf16.mxu1 %v2029_v41  ;;  %v653_v34 = vld [vmem:[%s2891_s14 + $0x370] sm:$0xff]  ;;  %v698_v41 = vld [vmem:[%s2942_s8 + $0xd8] sm:$0xff] }
  0xe4   : > { %v3218_v42 = vpack.c.bf16 %v653_v34, %v649_v33  ;;  %v429_v33 = vld [vmem:[%s2884_s9 + $0x70] sm:$0xff]  ;;  %v434_v34 = vld [vmem:[%s2884_s9 + $0x98] sm:$0xff] }
  0xe6   : > { %1937 = vmatmul.mubr.msk.f32.gmra.mrb[42].mxu0 %vm719_vm0, %v692_v44  ;;  %v699_v44 = vld [vmem:[%s2942_s8 + $0xe0] sm:$0xff] }
  0xe7   : > { %1012 = vmatprep.mubr.f32.mxu0 %v2606_v16 }
  0xe8   : > { %2084 = vmatpush1.bf16.xpose.msra.mxu0 %v3160_v45 }
  0xe9   : > { %2086 = vmatprep.subr.bf16.mxu0 %v3164_v48 }
  0xea   : > { %1938 = vmatmul.mubr.msk.f32.gmra.mrb[44].mxu0 %vm719_vm0, %v693_v54  ;;  %2032 = vmatpush1.bf16.xpose.msra.mxu1 %v2031_v55  ;;  %v670_v54 = vld [vmem:[%s2891_s14 + $0x3f8] sm:$0xff]  ;;  %v700_v55 = vld [vmem:[%s2942_s8 + $0xe8] sm:$0xff]  ;;  %s2607_s8 = smov [#allocation8]  }
  0xeb   : > { %1018 = vmatprep.mubr.f32.mxu0 %v2606_v16  ;;  %2034 = vmatprep.subr.bf16.mxu1 %v2033_v60  ;;  %v424_v60 = vld [vmem:[%s2884_s9 + $0x48] sm:$0xff] }
  0xee   : > { %1939 = vmatmul.mubr.msk.f32.gmra.mrb[46].mxu0 %vm719_vm0, %v694_v63  ;;  %v428_v63 = vld [vmem:[%s2884_s9 + $0x68] sm:$0xff] }
  0xef   : > { %1024 = vmatprep.mubr.f32.mxu0 %v2606_v16 }
  0xf0   : > { %2088 = vmatpush1.bf16.xpose.msra.mxu0 %v3180_v0 }
  0xf1   : > { %2090 = vmatprep.subr.bf16.mxu0 %v3184_v5 }
  0xf2   : > { %1940 = vmatmul.mubr.msk.f32.gmra.mrb[48].mxu0 %vm719_vm0, %v695_v12  ;;  %2036 = vmatpush1.bf16.xpose.msra.mxu1 %v2035_v13  ;;  %v418_v12 = vld [vmem:[%s2884_s9 + $0x18] sm:$0xff]  ;;  %v432_v13 = vld [vmem:[%s2884_s9 + $0x88] sm:$0xff] }
  0xf3   : > { %1030 = vmatprep.mubr.f32.mxu0 %v2606_v16  ;;  %2038 = vmatprep.subr.bf16.mxu1 %v2037_v17  ;;  %v422_v17 = vld [vmem:[%s2884_s9 + $0x38] sm:$0xff] }
  0xf6   : > { %1941 = vmatmul.mubr.msk.f32.gmra.mrb[50].mxu0 %vm719_vm0, %v696_v21  ;;  %v444_v21 = vld [vmem:[%s2884_s9 + $0xe8] sm:$0xff] }
  0xf7   : > { %1036 = vmatprep.mubr.f32.mxu0 %v2606_v16 }
  0xf8   : > { %2092 = vmatpush1.bf16.xpose.msra.mxu0 %v3200_v24 }
  0xf9   : > { %2094 = vmatprep.subr.bf16.mxu0 %v3204_v29 }
  0xfa   : > { %1942 = vmatmul.mubr.msk.f32.gmra.mrb[52].mxu0 %vm719_vm0, %v697_v31  ;;  %2040 = vmatpush1.bf16.xpose.msra.mxu1 %v2039_v32  ;;  %v430_v31 = vld [vmem:[%s2884_s9 + $0x78] sm:$0xff]  ;;  %v447_v32 = vld [vmem:[%s2884_s9 + $0x100] sm:$0xff] }
  0xfb   : > { %1042 = vmatprep.mubr.f32.mxu0 %v2606_v16  ;;  %2105 = vmatprep.subr.bf16.mxu1 %v2944_v58  ;;  %v666_v58 = vld [vmem:[%s2891_s14 + $0x3d8] sm:$0xff] }
  0xfc   : > { %v3243_v61 = vpack.c.bf16 %v670_v54, %v666_v58  ;;  %v446_v58 = vld [vmem:[%s2884_s9 + $0xf8] sm:$0xff]  ;;  %v463_v54 = vld [vmem:[%s2884_s9 + $0x180] sm:$0xff] }
  0xfe   : > { %1943 = vmatmul.mubr.msk.f32.gmra.mrb[54].mxu0 %vm719_vm0, %v698_v41  ;;  %v438_v41 = vld [vmem:[%s2884_s9 + $0xb8] sm:$0xff] }
  0xff   : > { %1048 = vmatprep.mubr.f32.mxu0 %v2606_v16 }
 0x100   : > { %2096 = vmatpush1.bf16.xpose.msra.mxu0 %v3218_v42 }
 0x101   : > { %2098 = vmatprep.subr.bf16.mxu0 %v3221_v43  ;;  %1138 = vmatmul.mubr.f32.vlgmr.msra.gmra.mrb[0].mxu1 %v415_v46  ;;  %v437_v46 = vld [vmem:[%s2884_s9 + $0xb0] sm:$0xff] }
 0x102   : > { %1944 = vmatmul.mubr.msk.f32.gmra.mrb[56].mxu0 %vm719_vm0, %v699_v44  ;;  %2121 = vmatpush1.bf16.xpose.msra.mxu1 %v2959_v7  ;;  %v423_v7 = vld [vmem:[%s2884_s9 + $0x40] sm:$0xff] }
 0x103   : > { %1054 = vmatprep.mubr.f32.mxu0 %v2606_v16  ;;  %1143 = vmatprep.mubr.f32.mxu1 %v420_v47  ;;  %v455_v44 = vld [vmem:[%s2884_s9 + $0x140] sm:$0xff]  ;;  %v442_v47 = vld [vmem:[%s2884_s9 + $0xd8] sm:$0xff] }
 0x104   : > { %2106 = vmatprep.subr.bf16.mxu1 %v2963_v10  ;;  %v665_v10 = vld [vmem:[%s2891_s14 + $0x3d0] sm:$0xff]  ;;  %s1960_s14 = sshll.u32 %s2584_s27, 7 }
 0x105   : > { %1144 = vmatmul.mubr.f32.gmra.mrb[2].mxu1 %v419_v57  ;;  %v3259_v9 = vpack.c.bf16 %v669_v2, %v665_v10  ;;  %v450_v57 = vld [vmem:[%s2884_s9 + $0x118] sm:$0xff]  ;;  %v453_v10 = vld [vmem:[%s2884_s9 + $0x130] sm:$0xff]  ;;  %s1741_s7 = sadd.s32 %s1960_s14, %s3530_s17  ;;  %s2454_s17 = sshll.u32 %s2607_s8, 4  ;;  %s2455_s17 = int_to_ptr.vmem [resolvable:$false] %s2454_s17 }
 0x106   : > { %1945 = vmatmul.mubr.msk.f32.gmra.mrb[58].mxu0 %vm719_vm0, %v700_v55  ;;  %1149 = vmatprep.mubr.f32.mxu1 %v424_v60  ;;  %v445_v55 = vld [vmem:[%s2884_s9 + $0xf0] sm:$0xff]  ;;  %v458_v2 = vld [vmem:[%s2884_s9 + $0x158] sm:$0xff]  ;;  %s1952_s27 = sshll.u32 %s1741_s7, 7  ;;  %p2457_p3 = scmp.lt.s32.totalorder %s3753_s15, %s2455_s17 }
 0x107   : > { %1060 = vmatprep.mubr.f32.mxu0 %v2606_v16  ;;  %v449_v60 = vld [vmem:[%s2884_s9 + $0x110] sm:$0xff]  ;;  %s3750_s26 = scalar_lea.hbm %s3841_s5, %s1952_s27 }
 0x108   : > { %2100 = vmatpush1.bf16.xpose.msra.mxu0 %v3239_v59 }
 0x109   : > { %2102 = vmatprep.subr.bf16.mxu0 %v3243_v61  ;;  %1150 = vmatmul.mubr.f32.gmra.mrb[4].mxu1 %v423_v7  ;;  %v454_v7 = vld [vmem:[%s2884_s9 + $0x138] sm:$0xff] }
 0x10a   : > { %1946 = vmatmul.mubr.msk.f32.gmra.mrb[60].mxu0 %vm719_vm0, %v701_v62  ;;  %2122 = vmatpush1.bf16.xpose.msra.mxu1 %v2979_v22  ;;  %v436_v22 = vld [vmem:[%s2884_s9 + $0xa8] sm:$0xff] }
 0x10b   : > { %1066 = vmatprep.mubr.f32.mxu0 %v2606_v16  ;;  %1155 = vmatprep.mubr.f32.mxu1 %v428_v63  ;;  %v431_v16 = vld [vmem:[%s2884_s9 + $0x80] sm:$0xff]  ;;  %v472_v62 = vld [vmem:[%s2884_s9 + $0x1c8] sm:$0xff] }
 0x10c   : > { %2107 = vmatprep.subr.bf16.mxu1 %v2983_v25  ;;  %v440_v25 = vld [vmem:[%s2884_s9 + $0xc8] sm:$0xff]  ;;  %v471_v63 = vld [vmem:[%s2884_s9 + $0x1c0] sm:$0xff] }
 0x10d   : > { %1156 = vmatmul.mubr.f32.gmra.mrb[6].mxu1 %v427_v8  ;;  %v480_v8 = vld [vmem:[%s2884_s9 + $0x208] sm:$0xff] }
 0x10e   : > { %1947 = vmatmul.mubr.msk.f32.gmra.mrb[62].mxu0 %vm719_vm0, %v702_v3  ;;  %1161 = vmatprep.mubr.f32.mxu1 %v432_v13  ;;  %v457_v3 = vld [vmem:[%s2884_s9 + $0x150] sm:$0xff]  ;;  %v479_v13 = vld [vmem:[%s2884_s9 + $0x200] sm:$0xff] }
 0x10f   : > { %1394 = vmatprep.mubr.f32.mxu0 %v418_v12  ;;  %v462_v12 = vld [vmem:[%s2884_s9 + $0x178] sm:$0xff] }
 0x110   : > { %2104 = vmatpush1.bf16.xpose.msra.mxu0 %v3259_v9 }
 0x111   : > { %1162 = vmatmul.mubr.f32.gmra.mrb[8].mxu1 %v431_v16  ;;  %v461_v16 = vld [vmem:[%s2884_s9 + $0x170] sm:$0xff] }
 0x112   : > { %2123 = vmatpush1.bf16.xpose.msra.mxu1 %v2999_v36  ;;  %1167 = vmatprep.mubr.f32.mxu1 %v436_v22  ;;  %v426_v36 = vld [vmem:[%s2884_s9 + $0x58] sm:$0xff] }
 0x113   : > { %2108 = vmatprep.subr.bf16.mxu1 %v3003_v39  ;;  %v443_v39 = vld [vmem:[%s2884_s9 + $0xe0] sm:$0xff]  ;;  %v466_v22 = vld [vmem:[%s2884_s9 + $0x198] sm:$0xff] }
 0x115   : > { %1168 = vmatmul.mubr.f32.gmra.mrb[10].mxu1 %v435_v14  ;;  %v465_v14 = vld [vmem:[%s2884_s9 + $0x190] sm:$0xff] }
 0x116   : > { %1173 = vmatprep.mubr.f32.mxu1 %v440_v25  ;;  %v470_v25 = vld [vmem:[%s2884_s9 + $0x1b8] sm:$0xff] }
 0x117   : > { %1395 = vmatmul.mubr.f32.vlgmr.msra.gmra.mrb[64].mxu0 %v417_v15  ;;  %v488_v15 = vld [vmem:[%s2884_s9 + $0x248] sm:$0xff] }
 0x118   : > { %1400 = vmatprep.mubr.f32.mxu0 %v422_v17  ;;  %v487_v17 = vld [vmem:[%s2884_s9 + $0x240] sm:$0xff] }
 0x119   : > { %1174 = vmatmul.mubr.f32.gmra.mrb[12].mxu1 %v439_v18  ;;  %v469_v18 = vld [vmem:[%s2884_s9 + $0x1b0] sm:$0xff] }
 0x11a   : > { %2124 = vmatpush1.bf16.xpose.msra.mxu1 %v3019_v50  ;;  %1179 = vmatprep.mubr.f32.mxu1 %v444_v21  ;;  %v452_v50 = vld [vmem:[%s2884_s9 + $0x128] sm:$0xff]  ;;  %v473_v21 = vld [vmem:[%s2884_s9 + $0x1d0] sm:$0xff] }
 0x11b   : > { %1401 = vmatmul.mubr.f32.gmra.mrb[66].mxu0 %v421_v20  ;;  %2109 = vmatprep.subr.bf16.mxu1 %v3023_v53  ;;  %v451_v53 = vld [vmem:[%s2884_s9 + $0x120] sm:$0xff]  ;;  %v474_v20 = vld [vmem:[%s2884_s9 + $0x1d8] sm:$0xff] }
 0x11c   : > { %1406 = vmatprep.mubr.f32.mxu0 %v426_v36  ;;  %v496_v36 = vld [vmem:[%s2884_s9 + $0x288] sm:$0xff] }
 0x11d   : > { %1180 = vmatmul.mubr.f32.gmra.mrb[14].mxu1 %v443_v39  ;;  %v478_v39 = vld [vmem:[%s2884_s9 + $0x1f8] sm:$0xff] }
 0x11e   : > { %1185 = vmatprep.mubr.f32.mxu1 %v448_v28  ;;  %v477_v28 = vld [vmem:[%s2884_s9 + $0x1f0] sm:$0xff] }
 0x11f   : > { %1407 = vmatmul.mubr.f32.gmra.mrb[68].mxu0 %v425_v26  ;;  %v495_v26 = vld [vmem:[%s2884_s9 + $0x280] sm:$0xff] }
 0x120   : > { %1412 = vmatprep.mubr.f32.mxu0 %v430_v31  ;;  %v482_v31 = vld [vmem:[%s2884_s9 + $0x218] sm:$0xff] }
 0x121   : > { %1186 = vmatmul.mubr.f32.gmra.mrb[16].mxu1 %v447_v32  ;;  %v481_v32 = vld [vmem:[%s2884_s9 + $0x210] sm:$0xff] }
 0x122   : > { %2125 = vmatpush1.bf16.xpose.msra.mxu1 %v3039_v1  ;;  %1191 = vmatprep.mubr.f32.mxu1 %v452_v50  ;;  %v460_v1 = vld [vmem:[%s2884_s9 + $0x168] sm:$0xff]  ;;  %v486_v50 = vld [vmem:[%s2884_s9 + $0x238] sm:$0xff] }
 0x123   : > { %1413 = vmatmul.mubr.f32.gmra.mrb[70].mxu0 %v429_v33  ;;  %2110 = vmatprep.subr.bf16.mxu1 %v3043_v4  ;;  %v459_v4 = vld [vmem:[%s2884_s9 + $0x160] sm:$0xff]  ;;  %v504_v33 = vld [vmem:[%s2884_s9 + $0x2c8] sm:$0xff] }
 0x124   : > { %1418 = vmatprep.mubr.f32.mxu0 %v434_v34  ;;  %v503_v34 = vld [vmem:[%s2884_s9 + $0x2c0] sm:$0xff] }
 0x125   : > { %1192 = vmatmul.mubr.f32.gmra.mrb[18].mxu1 %v451_v53  ;;  %v485_v53 = vld [vmem:[%s2884_s9 + $0x230] sm:$0xff] }
 0x126   : > { %1197 = vmatprep.mubr.f32.mxu1 %v456_v38  ;;  %v489_v38 = vld [vmem:[%s2884_s9 + $0x250] sm:$0xff] }
 0x127   : > { %1419 = vmatmul.mubr.f32.gmra.mrb[72].mxu0 %v433_v37  ;;  %v490_v37 = vld [vmem:[%s2884_s9 + $0x258] sm:$0xff] }
 0x128   : > { %1424 = vmatprep.mubr.f32.mxu0 %v438_v41  ;;  %v512_v41 = vld [vmem:[%s2884_s9 + $0x308] sm:$0xff] }
 0x129   : > { %1198 = vmatmul.mubr.f32.gmra.mrb[20].mxu1 %v455_v44  ;;  %v494_v44 = vld [vmem:[%s2884_s9 + $0x278] sm:$0xff] }
 0x12a   : > { %2126 = vmatpush1.bf16.xpose.msra.mxu1 %v3060_v19  ;;  %1203 = vmatprep.mubr.f32.mxu1 %v460_v1  ;;  %v468_v19 = vld [vmem:[%s2884_s9 + $0x1a8] sm:$0xff]  ;;  %v493_v1 = vld [vmem:[%s2884_s9 + $0x270] sm:$0xff] }
 0x12b   : > { %1425 = vmatmul.mubr.f32.gmra.mrb[74].mxu0 %v437_v46  ;;  %2111 = vmatprep.subr.bf16.mxu1 %v3064_v23  ;;  %v467_v23 = vld [vmem:[%s2884_s9 + $0x1a0] sm:$0xff] }
 0x12c   : > { %1430 = vmatprep.mubr.f32.mxu0 %v442_v47  ;;  %v511_v46 = vld [vmem:[%s2884_s9 + $0x300] sm:$0xff]  ;;  %v516_v47 = vld [vmem:[%s2884_s9 + $0x328] sm:$0xff] }
 0x12d   : > { %1204 = vmatmul.mubr.f32.gmra.mrb[22].mxu1 %v459_v4  ;;  %v497_v4 = vld [vmem:[%s2884_s9 + $0x290] sm:$0xff] }
 0x12e   : > { %1209 = vmatprep.mubr.f32.mxu1 %v464_v51 }
 0x12f   : > { %1431 = vmatmul.mubr.f32.gmra.mrb[76].mxu0 %v441_v49  ;;  %v520_v49 = vld [vmem:[%s2884_s9 + $0x348] sm:$0xff] }
 0x130   : > { %1436 = vmatprep.mubr.f32.mxu0 %v446_v58  ;;  %v502_v58 = vld [vmem:[%s2884_s9 + $0x2b8] sm:$0xff] }
 0x131   : > { %1210 = vmatmul.mubr.f32.gmra.mrb[24].mxu1 %v463_v54 }
 0x132   : > { %2127 = vmatpush1.bf16.xpose.msra.mxu1 %v3080_v35  ;;  %1215 = vmatprep.mubr.f32.mxu1 %v468_v19  ;;  %v476_v35 = vld [vmem:[%s2884_s9 + $0x1e8] sm:$0xff] }
 0x133   : > { %1437 = vmatmul.mubr.f32.gmra.mrb[78].mxu0 %v445_v55  ;;  %2112 = vmatprep.subr.bf16.mxu1 %v3084_v40  ;;  %v475_v40 = vld [vmem:[%s2884_s9 + $0x1e0] sm:$0xff]  ;;  %v501_v55 = vld [vmem:[%s2884_s9 + $0x2b0] sm:$0xff]  ;;  %v524_v19 = vld [vmem:[%s2884_s9 + $0x368] sm:$0xff] }
 0x134   : > { %1442 = vmatprep.mubr.f32.mxu0 %v450_v57 }
 0x135   : > { %1216 = vmatmul.mubr.f32.gmra.mrb[26].mxu1 %v467_v23  ;;  %v506_v23 = vld [vmem:[%s2884_s9 + $0x2d8] sm:$0xff] }
 0x136   : > { %1221 = vmatprep.mubr.f32.mxu1 %v472_v62  ;;  %v505_v62 = vld [vmem:[%s2884_s9 + $0x2d0] sm:$0xff] }
 0x137   : > { %1443 = vmatmul.mubr.f32.gmra.mrb[80].mxu0 %v449_v60 }
 0x138   : > { %1448 = vmatprep.mubr.f32.mxu0 %v454_v7  ;;  %v528_v7 = vld [vmem:[%s2884_s9 + $0x388] sm:$0xff] }
 0x139   : > { %1222 = vmatmul.mubr.f32.gmra.mrb[28].mxu1 %v471_v63 }
 0x13a   : > { %2128 = vmatpush1.bf16.xpose.msra.mxu1 %v3100_v52  ;;  %1227 = vmatprep.mubr.f32.mxu1 %v476_v35  ;;  %v484_v52 = vld [vmem:[%s2884_s9 + $0x228] sm:$0xff] }
 0x13b   : > { %1449 = vmatmul.mubr.f32.gmra.mrb[82].mxu0 %v453_v10  ;;  %2113 = vmatprep.subr.bf16.mxu1 %v3104_v56  ;;  %v483_v56 = vld [vmem:[%s2884_s9 + $0x220] sm:$0xff]  ;;  %v510_v10 = vld [vmem:[%s2884_s9 + $0x2f8] sm:$0xff] }
 0x13c   : > { %1454 = vmatprep.mubr.f32.mxu0 %v458_v2  ;;  %v509_v2 = vld [vmem:[%s2884_s9 + $0x2f0] sm:$0xff] }
 0x13d   : > { %1228 = vmatmul.mubr.f32.gmra.mrb[30].mxu1 %v475_v40  ;;  %v532_v40 = vld [vmem:[%s2884_s9 + $0x3a8] sm:$0xff] }
 0x13e   : > { %1233 = vmatprep.mubr.f32.mxu1 %v480_v8  ;;  %v514_v8 = vld [vmem:[%s2884_s9 + $0x318] sm:$0xff] }
 0x13f   : > { %1455 = vmatmul.mubr.f32.gmra.mrb[84].mxu0 %v457_v3 }
 0x140   : > { %1460 = vmatprep.mubr.f32.mxu0 %v462_v12 }
 0x141   : > { %1234 = vmatmul.mubr.f32.gmra.mrb[32].mxu1 %v479_v13  ;;  %v513_v13 = vld [vmem:[%s2884_s9 + $0x310] sm:$0xff] }
 0x142   : > { %2129 = vmatpush1.bf16.xpose.msra.mxu1 %v3120_v6  ;;  %1239 = vmatprep.mubr.f32.mxu1 %v484_v52  ;;  %v492_v6 = vld [vmem:[%s2884_s9 + $0x268] sm:$0xff] }
 0x143   : > { %1461 = vmatmul.mubr.f32.gmra.mrb[86].mxu0 %v461_v16  ;;  %2114 = vmatprep.subr.bf16.mxu1 %v3124_v11  ;;  %v491_v11 = vld [vmem:[%s2884_s9 + $0x260] sm:$0xff]  ;;  %v536_v16 = vld [vmem:[%s2884_s9 + $0x3c8] sm:$0xff] }
 0x144   : > { %1466 = vmatprep.mubr.f32.mxu0 %v466_v22  ;;  %v518_v22 = vld [vmem:[%s2884_s9 + $0x338] sm:$0xff] }
 0x145   : > { %1240 = vmatmul.mubr.f32.gmra.mrb[34].mxu1 %v483_v56 }
 0x146   : > { %1245 = vmatprep.mubr.f32.mxu1 %v488_v15  ;;  %v540_v15 = vld [vmem:[%s2884_s9 + $0x3e8] sm:$0xff] }
 0x147   : > { %1467 = vmatmul.mubr.f32.gmra.mrb[88].mxu0 %v465_v14  ;;  %v517_v14 = vld [vmem:[%s2884_s9 + $0x330] sm:$0xff] }
 0x148   : > { %1472 = vmatprep.mubr.f32.mxu0 %v470_v25 }
 0x149   : > { %1246 = vmatmul.mubr.f32.gmra.mrb[36].mxu1 %v487_v17  ;;  %v522_v17 = vld [vmem:[%s2884_s9 + $0x358] sm:$0xff] }
 0x14a   : > { %2130 = vmatpush1.bf16.xpose.msra.mxu1 %v3140_v27  ;;  %1251 = vmatprep.mubr.f32.mxu1 %v492_v6  ;;  %v500_v27 = vld [vmem:[%s2884_s9 + $0x2a8] sm:$0xff]  ;;  %v521_v6 = vld [vmem:[%s2884_s9 + $0x350] sm:$0xff] }
 0x14b   : > { %1473 = vmatmul.mubr.f32.gmra.mrb[90].mxu0 %v469_v18  ;;  %2115 = vmatprep.subr.bf16.mxu1 %v3144_v30  ;;  %v499_v30 = vld [vmem:[%s2884_s9 + $0x2a0] sm:$0xff] }
 0x14c   : > { %1478 = vmatprep.mubr.f32.mxu0 %v474_v20  ;;  %v538_v20 = vld [vmem:[%s2884_s9 + $0x3d8] sm:$0xff] }
 0x14d   : > { %1252 = vmatmul.mubr.f32.gmra.mrb[38].mxu1 %v491_v11 }
 0x14e   : > { %1257 = vmatprep.mubr.f32.mxu1 %v496_v36 }
 0x14f   : > { %1479 = vmatmul.mubr.f32.gmra.mrb[92].mxu0 %v473_v21  ;;  %v526_v21 = vld [vmem:[%s2884_s9 + $0x378] sm:$0xff] }
 0x150   : > { %1484 = vmatprep.mubr.f32.mxu0 %v478_v39  ;;  %v537_v39 = vld [vmem:[%s2884_s9 + $0x3d0] sm:$0xff] }
 0x151   : > { %1258 = vmatmul.mubr.f32.gmra.mrb[40].mxu1 %v495_v26  ;;  %v542_v26 = vld [vmem:[%s2884_s9 + $0x3f8] sm:$0xff] }
 0x152   : > { %2131 = vmatpush1.bf16.xpose.msra.mxu1 %v3160_v45  ;;  %1263 = vmatprep.mubr.f32.mxu1 %v500_v27  ;;  %v508_v45 = vld [vmem:[%s2884_s9 + $0x2e8] sm:$0xff]  ;;  %v530_v27 = vld [vmem:[%s2884_s9 + $0x398] sm:$0xff] }
 0x153   : > { %1485 = vmatmul.mubr.f32.gmra.mrb[94].mxu0 %v477_v28  ;;  %2116 = vmatprep.subr.bf16.mxu1 %v3164_v48  ;;  %v507_v48 = vld [vmem:[%s2884_s9 + $0x2e0] sm:$0xff] }
 0x154   : > { %1490 = vmatprep.mubr.f32.mxu0 %v482_v31 }
 0x155   : > { %1264 = vmatmul.mubr.f32.gmra.mrb[42].mxu1 %v499_v30  ;;  %v541_v30 = vld [vmem:[%s2884_s9 + $0x3f0] sm:$0xff] }
 0x156   : > { %1269 = vmatprep.mubr.f32.mxu1 %v504_v33 }
 0x157   : > { %1491 = vmatmul.mubr.f32.gmra.mrb[96].mxu0 %v481_v32  ;;  %v529_v32 = vld [vmem:[%s2884_s9 + $0x390] sm:$0xff] }
 0x158   : > { %1496 = vmatprep.mubr.f32.mxu0 %v486_v50  ;;  %v534_v50 = vld [vmem:[%s2884_s9 + $0x3b8] sm:$0xff] }
 0x159   : > { %1270 = vmatmul.mubr.f32.gmra.mrb[44].mxu1 %v503_v34 }
 0x15a   : > { %2132 = vmatpush1.bf16.xpose.msra.mxu1 %v3180_v0  ;;  %1275 = vmatprep.mubr.f32.mxu1 %v508_v45  ;;  %v498_v0 = vld [vmem:[%s2884_s9 + $0x298] sm:$0xff] }
 0x15b   : > { %1497 = vmatmul.mubr.f32.gmra.mrb[98].mxu0 %v485_v53  ;;  %2117 = vmatprep.subr.bf16.mxu1 %v3184_v5  ;;  %v515_v5 = vld [vmem:[%s2884_s9 + $0x320] sm:$0xff]  ;;  %v533_v53 = vld [vmem:[%s2884_s9 + $0x3b0] sm:$0xff] }
 0x15c   : > { %1502 = vmatprep.mubr.f32.mxu0 %v490_v37 }
 0x15d   : > { %1276 = vmatmul.mubr.f32.gmra.mrb[46].mxu1 %v507_v48 }
 0x15e   : > { %1281 = vmatprep.mubr.f32.mxu1 %v512_v41 }
 0x15f   : > { %1503 = vmatmul.mubr.f32.gmra.mrb[100].mxu0 %v489_v38 }
 0x160   : > { %1508 = vmatprep.mubr.f32.mxu0 %v494_v44 }
 0x161   : > { %1282 = vmatmul.mubr.f32.gmra.mrb[48].mxu1 %v511_v46 }
 0x162   : > { %2133 = vmatpush1.bf16.xpose.msra.mxu1 %v3200_v24  ;;  %1287 = vmatprep.mubr.f32.mxu1 %v516_v47  ;;  %v519_v24 = vld [vmem:[%s2884_s9 + $0x340] sm:$0xff] }
 0x163   : > { %1509 = vmatmul.mubr.f32.gmra.mrb[102].mxu0 %v493_v1  ;;  %2118 = vmatprep.subr.bf16.mxu1 %v3204_v29  ;;  %v523_v29 = vld [vmem:[%s2884_s9 + $0x360] sm:$0xff] }
 0x164   : > { %1514 = vmatprep.mubr.f32.mxu0 %v498_v0 }
 0x165   : > { %v3372_v51 = vpop.f32.mrb[0].mxu0  ;;  %1288 = vmatmul.mubr.f32.gmra.mrb[50].mxu1 %v515_v5 }
 0x166   : > { %v3376_v54 = vpop.f32.mrb[1].mxu0  ;;  %1293 = vmatprep.mubr.f32.mxu1 %v520_v49 }
 0x167   : > { %1515 = vmatmul.mubr.f32.gmra.mrb[104].mxu0 %v497_v4 }
 0x168   : > { %1520 = vmatprep.mubr.f32.mxu0 %v502_v58 }
 0x169   : > { %v3381_v57 = vpop.f32.mrb[2].mxu0  ;;  %1294 = vmatmul.mubr.f32.gmra.mrb[52].mxu1 %v519_v24 }
 0x16a   : > { %v3384_v60 = vpop.f32.mrb[3].mxu0  ;;  %2134 = vmatpush1.bf16.xpose.msra.mxu1 %v3218_v42  ;;  %1299 = vmatprep.mubr.f32.mxu1 %v524_v19  ;;  %v527_v42 = vld [vmem:[%s2884_s9 + $0x380] sm:$0xff] }
 0x16b   : > { %1521 = vmatmul.mubr.f32.gmra.mrb[106].mxu0 %v501_v55  ;;  %2119 = vmatprep.subr.bf16.mxu1 %v3221_v43  ;;  %v531_v43 = vld [vmem:[%s2884_s9 + $0x3a0] sm:$0xff] }
 0x16c   : > { %1526 = vmatprep.mubr.f32.mxu0 %v506_v23 }
 0x16d   : > { %v3390_v63 = vpop.f32.mrb[4].mxu0  ;;  %1300 = vmatmul.mubr.f32.gmra.mrb[54].mxu1 %v523_v29 }
 0x16e   : > { %v3394_v35 = vpop.f32.mrb[5].mxu0  ;;  %1305 = vmatprep.mubr.f32.mxu1 %v528_v7 }
 0x16f   : > { %1527 = vmatmul.mubr.f32.gmra.mrb[108].mxu0 %v505_v62 }
 0x170   : > { %1532 = vmatprep.mubr.f32.mxu0 %v510_v10 }
 0x171   : > { %v3399_v3 = vpop.f32.mrb[6].mxu0  ;;  %1306 = vmatmul.mubr.f32.gmra.mrb[56].mxu1 %v527_v42 }
 0x172   : > { %v3402_v12 = vpop.f32.mrb[7].mxu0  ;;  %2135 = vmatpush1.bf16.xpose.msra.mxu1 %v3239_v59  ;;  %1311 = vmatprep.mubr.f32.mxu1 %v532_v40  ;;  %v535_v59 = vld [vmem:[%s2884_s9 + $0x3c0] sm:$0xff] }
 0x173   : > { %1533 = vmatmul.mubr.f32.gmra.mrb[110].mxu0 %v509_v2  ;;  %2120 = vmatprep.subr.bf16.mxu1 %v3243_v61  ;;  %v539_v61 = vld [vmem:[%s2884_s9 + $0x3e0] sm:$0xff] }
 0x174   : > { %1538 = vmatprep.mubr.f32.mxu0 %v514_v8 }
 0x175   : > { %v3408_v52 = vpop.f32.mrb[8].mxu0  ;;  %1312 = vmatmul.mubr.f32.gmra.mrb[58].mxu1 %v531_v43 }
 0x176   : > { %v3412_v56 = vpop.f32.mrb[9].mxu0  ;;  %1317 = vmatprep.mubr.f32.mxu1 %v536_v16 }
 0x177   : > { %1539 = vmatmul.mubr.f32.gmra.mrb[112].mxu0 %v513_v13 }
 0x178   : > { %1544 = vmatprep.mubr.f32.mxu0 %v518_v22 }
 0x179   : > { %v3417_v25 = vpop.f32.mrb[10].mxu0  ;;  %1318 = vmatmul.mubr.f32.gmra.mrb[60].mxu1 %v535_v59 }
 0x17a   : > { %v3420_v18 = vpop.f32.mrb[11].mxu0  ;;  %2136 = vmatpush1.bf16.xpose.msra.mxu1 %v3259_v9  ;;  %1323 = vmatprep.mubr.f32.mxu1 %v540_v15  ;;  %v525_v9 = vld [vmem:[%s2884_s9 + $0x370] sm:$0xff]  ;;  %s411_s9 = scalar_lea.vmem %s3840_s4, %s410_s28  ;;  %s2456_s28 = scalar_lea.vmem %s2455_s17, 16384 }
 0x17b   : > { %1545 = vmatmul.mubr.f32.gmra.mrb[114].mxu0 %v517_v14  ;;  %p2458_p8 = scmp.lt.s32.totalorder %s2456_s28, %s2450_s18 }
 0x17c   : > { %1550 = vmatprep.mubr.f32.mxu0 %v522_v17 }
 0x17d   : > { %v3426_v11 = vpop.f32.mrb[12].mxu0  ;;  %1324 = vmatmul.mubr.f32.gmra.mrb[62].mxu1 %v539_v61  ;;  %p2459_p6 = por %p2458_p8, %p2457_p3 }
 0x17e   : > { %v3429_v36 = vpop.f32.mrb[13].mxu0  ;;  %1574 = vmatprep.mubr.f32.mxu1 %v538_v20 }
 0x17f   : > { %1551 = vmatmul.mubr.f32.gmra.mrb[116].mxu0 %v521_v6  ;;  %p2460_p12 = pnand %p2459_p6, %p2453_p4 }
 0x180   : > { %1556 = vmatprep.mubr.f32.mxu0 %v526_v21 }
 0x181   : > { %v3434_v28 = vpop.f32.mrb[14].mxu0  ;;  %1575 = vmatmul.mubr.f32.vlgmr.msra.gmra.mrb[60].mxu1 %v537_v39 }
 0x182   : > { %v3437_v31 = vpop.f32.mrb[15].mxu0  ;;  %1580 = vmatprep.mubr.f32.mxu1 %v542_v26 }
 0x183   : > { %1557 = vmatmul.mubr.f32.gmra.mrb[118].mxu0 %v525_v9 }
 0x184   : > { %1562 = vmatprep.mubr.f32.mxu0 %v530_v27 }
 0x185   : > { %v3441_v33 = vpop.f32.mrb[16].mxu0  ;;  %1581 = vmatmul.mubr.f32.gmra.mrb[62].mxu1 %v541_v30 }
 0x186   : > { %v3444_v34 = vpop.f32.mrb[17].mxu0 }
 0x187   : > { %1563 = vmatmul.mubr.f32.gmra.mrb[120].mxu0 %v529_v32 }
 0x188   : > { %1568 = vmatprep.mubr.f32.mxu0 %v534_v50 }
 0x189   : > { %v3447_v45 = vpop.f32.mrb[18].mxu0 }
 0x18a   : > { %v3449_v37 = vpop.f32.mrb[19].mxu0 }
 0x18b   : > { %1569 = vmatmul.mubr.f32.gmra.mrb[122].mxu0 %v533_v53 }
 0x18d   : > { %v3451_v48 = vpop.f32.mrb[20].mxu0 }
 0x18e   : > { %v3453_v38 = vpop.f32.mrb[21].mxu0 }
 0x191   : > { %v3455_v41 = vpop.f32.mrb[22].mxu0 }
 0x192   : > { %v3457_v44 = vpop.f32.mrb[23].mxu0 }
 0x195   : > { %v3459_v46 = vpop.f32.mrb[24].mxu0 }
 0x196   : > { %v3461_v1 = vpop.f32.mrb[25].mxu0 }
 0x199   : > { %v3463_v47 = vpop.f32.mrb[26].mxu0 }
 0x19a   : > { %v3465_v0 = vpop.f32.mrb[27].mxu0 }
 0x19d   : > { %v3467_v5 = vpop.f32.mrb[28].mxu0 }
 0x19e   : > { %v3469_v4 = vpop.f32.mrb[29].mxu0 }
 0x1a1   : > { %v3471_v49 = vpop.f32.mrb[30].mxu0 }
 0x1a2   : > { %v3473_v58 = vpop.f32.mrb[31].mxu0 }
 0x1a5   : > { %v3475_v24 = vpop.f32.mrb[32].mxu0 }
 0x1a6   : > { %v3477_v55 = vpop.f32.mrb[33].mxu0 }
 0x1a9   : > { %v3479_v19 = vpop.f32.mrb[34].mxu0 }
 0x1aa   : > { %v3481_v23 = vpop.f32.mrb[35].mxu0 }
 0x1ad   : > { %v3483_v29 = vpop.f32.mrb[36].mxu0 }
 0x1ae   : > { %v3485_v62 = vpop.f32.mrb[37].mxu0 }
 0x1b1   : > { %v3487_v7 = vpop.f32.mrb[38].mxu0 }
 0x1b2   : > { %v3489_v10 = vpop.f32.mrb[39].mxu0 }
 0x1b5   : > { %v3491_v42 = vpop.f32.mrb[40].mxu0 }
 0x1b6   : > { %v3493_v2 = vpop.f32.mrb[41].mxu0 }
 0x1b9   : > { %v3495_v40 = vpop.f32.mrb[42].mxu0 }
 0x1ba   : > { %v3497_v8 = vpop.f32.mrb[43].mxu0 }
 0x1bd   : > { %v3499_v43 = vpop.f32.mrb[44].mxu0 }
 0x1be   : > { %v3501_v13 = vpop.f32.mrb[45].mxu0 }
 0x1c1   : > { %v3503_v16 = vpop.f32.mrb[46].mxu0 }
 0x1c2   : > { %v3505_v22 = vpop.f32.mrb[47].mxu0 }
 0x1c3   : > { %3876 = vst [vmem:[#allocation22_spill] sm:$0xff] %v3505_v22 }
 0x1c5   : > { %v3507_v59 = vpop.f32.mrb[48].mxu0 }
 0x1c6   : > { %3877 = vst [vmem:[#allocation23_spill] sm:$0xff] %v3507_v59  ;;  %v3509_v14 = vpop.f32.mrb[49].mxu0 }
 0x1c7   : > { %3878 = vst [vmem:[#allocation24_spill] sm:$0xff] %v3509_v14 }
 0x1c9   : > { %v3511_v15 = vpop.f32.mrb[50].mxu0 }
 0x1ca   : > { %3879 = vst [vmem:[#allocation25_spill] sm:$0xff] %v3511_v15  ;;  %v3513_v17 = vpop.f32.mrb[51].mxu0 }
 0x1cb   : > { %3880 = vst [vmem:[#allocation26_spill] sm:$0xff] %v3513_v17 }
 0x1cd   : > { %v3515_v61 = vpop.f32.mrb[52].mxu0 }
 0x1ce   : > { %3881 = vst [vmem:[#allocation27_spill] sm:$0xff] %v3515_v61  ;;  %v3517_v6 = vpop.f32.mrb[53].mxu0 }
 0x1cf   : > { %3882 = vst [vmem:[#allocation28_spill] sm:$0xff] %v3517_v6 }
 0x1d1   : > { %v3519_v20 = vpop.f32.mrb[54].mxu0 }
 0x1d2   : > { %3883 = vst [vmem:[#allocation29_spill] sm:$0xff] %v3519_v20  ;;  %v3521_v21 = vpop.f32.mrb[55].mxu0 }
 0x1d3   : > { %3884 = vst [vmem:[#allocation30_spill] sm:$0xff] %v3521_v21 }
 0x1d4   : > { %v1139_v9 = vpop.f32.mrb[0].mxu1 }
 0x1d5   : > { %v3523_v39 = vpop.f32.mrb[56].mxu0  ;;  %v1140_v27 = vadd.f32 %v1139_v9, %v3372_v51  ;;  %v1141_v30 = vpop.f32.mrb[1].mxu1  ;;  %v1589_v51 = vlaneseq }
 0x1d6   : > { %3885 = vst [vmem:[#allocation31_spill] sm:$0xff] %v3523_v39  ;;  %v3525_v26 = vpop.f32.mrb[57].mxu0  ;;  %v1142_v32 = vadd.f32 %v1141_v30, %v3376_v54 }
 0x1d7   : > { %3886 = vst [vmem:[#allocation32_spill] sm:$0xff] %v3525_v26 }
 0x1d8   : > { %v1145_v53 = vpop.f32.mrb[2].mxu1 }
 0x1d9   : > { %v3532_v50 = vpop.f32.mrb[58].mxu0  ;;  %v1146_v21 = vadd.f32 %v1145_v53, %v3381_v57  ;;  %v1147_v39 = vpop.f32.mrb[3].mxu1  ;;  %v1590_v57 = vshrl.u32 %v1589_v51, 7 }
 0x1da   : > { %3887 = vst [vmem:[#allocation33_spill] sm:$0xff] %v3532_v50  ;;  %v3534_v20 = vpop.f32.mrb[59].mxu0  ;;  %v1148_v26 = vadd.f32 %v1147_v39, %v3384_v60 }
 0x1db   : > { %3888 = vst [vmem:[#allocation34_spill] sm:$0xff] %v3534_v20 }
 0x1dc   : > { %v1151_v9 = vpop.f32.mrb[4].mxu1 }
 0x1dd   : > { %v3539_v6 = vpop.f32.mrb[60].mxu0  ;;  %v1152_v30 = vadd.f32 %v1151_v9, %v3390_v63  ;;  %v1153_v61 = vpop.f32.mrb[5].mxu1  ;;  %v1591_v9 = vsub.s32 0, %v1590_v57 }
 0x1de   : > { %3889 = vst [vmem:[#allocation35_spill] sm:$0xff] %v3539_v6  ;;  %v3541_v54 = vpop.f32.mrb[61].mxu0  ;;  %v1154_v50 = vadd.f32 %v1153_v61, %v3394_v35  ;;  %v1587_v35 = vld [vmem:[%s411_s9] sm:$0x3]  ;;  %v1595_v61 = vsub.s32 1, %v1590_v57 }
 0x1df   : > { %3890 = vst [vmem:[#allocation36_spill] sm:$0xff] %v3541_v54 }
 0x1e0   : > { %v1157_v53 = vpop.f32.mrb[6].mxu1  ;;  %v3562_v15 = vrot.slane %v1587_v35, %v1595_v61 }
 0x1e1   : > { %v3546_v20 = vpop.f32.mrb[62].mxu0  ;;  %v1158_v60 = vadd.f32 %v1157_v53, %v3399_v3  ;;  %v1159_v39 = vpop.f32.mrb[7].mxu1  ;;  %v3560_v3 = vrot.slane %v1587_v35, %v1591_v9 }
 0x1e2   : > { %3891 = vst [vmem:[#allocation37_spill] sm:$0xff] %v3546_v20  ;;  %v3548_v17 = vpop.f32.mrb[63].mxu0  ;;  %v1160_v63 = vadd.f32 %v1159_v39, %v3402_v12 }
 0x1e3   : > { %3892 = vst [vmem:[#allocation38_spill] sm:$0xff] %v3548_v17 }
 0x1e4   : > { %v1163_v54 = vpop.f32.mrb[8].mxu1 }
 0x1e5   : > { %v1164_v20 = vadd.f32 %v1163_v54, %v3408_v52  ;;  %v1165_v51 = vpop.f32.mrb[9].mxu1 }
 0x1e6   : > { %v1166_v6 = vadd.f32 %v1165_v51, %v3412_v56 }
 0x1e8   : > { %v1169_v53 = vpop.f32.mrb[10].mxu1 }
 0x1e9   : > { %v1170_v12 = vadd.f32 %v1169_v53, %v3417_v25  ;;  %v1171_v39 = vpop.f32.mrb[11].mxu1 }
 0x1ea   : > { %v1396_v17 = vpop.f32.mrb[64].mxu0  ;;  %v1172_v57 = vadd.f32 %v1171_v39, %v3420_v18 }
 0x1eb   : > { %v1397_v14 = vadd.f32 %v1396_v17, %v1140_v27  ;;  %v1398_v59 = vpop.f32.mrb[65].mxu0 }
 0x1ec   : > { %v1399_v22 = vadd.f32 %v1398_v59, %v1142_v32  ;;  %v1175_v54 = vpop.f32.mrb[12].mxu1 }
 0x1ed   : > { %v1599_v52 = vadd.f32 %v3560_v3, %v1397_v14  ;;  %v1176_v25 = vadd.f32 %v1175_v54, %v3426_v11  ;;  %v1177_v17 = vpop.f32.mrb[13].mxu1 }
 0x1ee   : > { %v1600_v56 = vadd.f32 %v3562_v15, %v1399_v22  ;;  %v1402_v51 = vpop.f32.mrb[66].mxu0  ;;  %v1178_v18 = vadd.f32 %v1177_v17, %v3429_v36 }
 0x1ef   : > { %1663 = vst [vmem:[%s3568_s24] sm:$0xff] %v1599_v52  ;;  %v1403_v27 = vadd.f32 %v1402_v51, %v1146_v21  ;;  %v1404_v9 = vpop.f32.mrb[67].mxu0 }
 0x1f0   : > { %1664 = vst [vmem:[%s3568_s24 + $0x8] sm:$0xff] %v1600_v56  ;;  %v1405_v59 = vadd.f32 %v1404_v9, %v1148_v26  ;;  %v1181_v32 = vpop.f32.mrb[14].mxu1 }
 0x1f1   : > { %v1601_v22 = vadd.f32 %v3560_v3, %v1403_v27  ;;  %v1182_v61 = vadd.f32 %v1181_v32, %v3434_v28  ;;  %v1183_v11 = vpop.f32.mrb[15].mxu1 }
 0x1f2   : > { %v1602_v14 = vadd.f32 %v3562_v15, %v1405_v59  ;;  %v1408_v35 = vpop.f32.mrb[68].mxu0  ;;  %v1184_v21 = vadd.f32 %v1183_v11, %v3437_v31 }
 0x1f3   : > { %1665 = vst [vmem:[%s3568_s24 + $0x10] sm:$0xff] %v1601_v22  ;;  %v1409_v53 = vadd.f32 %v1408_v35, %v1152_v30  ;;  %v1410_v39 = vpop.f32.mrb[69].mxu0 }
 0x1f4   : > { %1666 = vst [vmem:[%s3568_s24 + $0x18] sm:$0xff] %v1602_v14  ;;  %v1411_v52 = vadd.f32 %v1410_v39, %v1154_v50  ;;  %v1187_v56 = vpop.f32.mrb[16].mxu1 }
 0x1f5   : > { %v1603_v36 = vadd.f32 %v3560_v3, %v1409_v53  ;;  %v1188_v51 = vadd.f32 %v1187_v56, %v3441_v33  ;;  %v1189_v28 = vpop.f32.mrb[17].mxu1 }
 0x1f6   : > { %v1604_v26 = vadd.f32 %v3562_v15, %v1411_v52  ;;  %v1414_v54 = vpop.f32.mrb[70].mxu0  ;;  %v1190_v30 = vadd.f32 %v1189_v28, %v3444_v34 }
 0x1f7   : > { %1667 = vst [vmem:[%s3568_s24 + $0x20] sm:$0xff] %v1603_v36  ;;  %v1415_v17 = vadd.f32 %v1414_v54, %v1158_v60  ;;  %v1416_v27 = vpop.f32.mrb[71].mxu0 }
 0x1f8   : > { %1668 = vst [vmem:[%s3568_s24 + $0x28] sm:$0xff] %v1604_v26  ;;  %v1417_v9 = vadd.f32 %v1416_v27, %v1160_v63  ;;  %v1193_v59 = vpop.f32.mrb[18].mxu1 }
 0x1f9   : > { %v1605_v31 = vadd.f32 %v3560_v3, %v1415_v17  ;;  %v1194_v14 = vadd.f32 %v1193_v59, %v3447_v45  ;;  %v1195_v33 = vpop.f32.mrb[19].mxu1 }
 0x1fa   : > { %v1606_v50 = vadd.f32 %v3562_v15, %v1417_v9  ;;  %v1420_v22 = vpop.f32.mrb[72].mxu0  ;;  %v1196_v60 = vadd.f32 %v1195_v33, %v3449_v37 }
 0x1fb   : > { %1669 = vst [vmem:[%s3568_s24 + $0x30] sm:$0xff] %v1605_v31  ;;  %v1421_v32 = vadd.f32 %v1420_v22, %v1164_v20  ;;  %v1422_v35 = vpop.f32.mrb[73].mxu0 }
 0x1fc   : > { %1670 = vst [vmem:[%s3568_s24 + $0x38] sm:$0xff] %v1606_v50  ;;  %v1423_v11 = vadd.f32 %v1422_v35, %v1166_v6  ;;  %v1199_v53 = vpop.f32.mrb[20].mxu1 }
 0x1fd   : > { %v1607_v34 = vadd.f32 %v3560_v3, %v1421_v32  ;;  %v1200_v52 = vadd.f32 %v1199_v53, %v3451_v48  ;;  %v1201_v45 = vpop.f32.mrb[21].mxu1 }
 0x1fe   : > { %v1608_v63 = vadd.f32 %v3562_v15, %v1423_v11  ;;  %v1426_v39 = vpop.f32.mrb[74].mxu0  ;;  %v1202_v20 = vadd.f32 %v1201_v45, %v3453_v38 }
 0x1ff   : > { %1671 = vst [vmem:[%s3568_s24 + $0x40] sm:$0xff] %v1607_v34  ;;  %v1427_v36 = vadd.f32 %v1426_v39, %v1170_v12  ;;  %v1428_v26 = vpop.f32.mrb[75].mxu0 }
 0x200   : > { %1672 = vst [vmem:[%s3568_s24 + $0x48] sm:$0xff] %v1608_v63  ;;  %v1429_v56 = vadd.f32 %v1428_v26, %v1172_v57  ;;  %v1205_v54 = vpop.f32.mrb[22].mxu1 }
 0x201   : > { %v1609_v37 = vadd.f32 %v3560_v3, %v1427_v36  ;;  %v1206_v17 = vadd.f32 %v1205_v54, %v3455_v41  ;;  %v1207_v48 = vpop.f32.mrb[23].mxu1 }
 0x202   : > { %v1610_v6 = vadd.f32 %v3562_v15, %v1429_v56  ;;  %v1432_v28 = vpop.f32.mrb[76].mxu0  ;;  %v1208_v12 = vadd.f32 %v1207_v48, %v3457_v44 }
 0x203   : > { %1673 = vst [vmem:[%s3568_s24 + $0x50] sm:$0xff] %v1609_v37  ;;  %v1433_v27 = vadd.f32 %v1432_v28, %v1176_v25  ;;  %v1434_v9 = vpop.f32.mrb[77].mxu0 }
 0x204   : > { %1674 = vst [vmem:[%s3568_s24 + $0x58] sm:$0xff] %v1610_v6  ;;  %v1435_v31 = vadd.f32 %v1434_v9, %v1178_v18  ;;  %v1211_v50 = vpop.f32.mrb[24].mxu1 }
 0x205   : > { %v1611_v38 = vadd.f32 %v3560_v3, %v1433_v27  ;;  %v1212_v22 = vadd.f32 %v1211_v50, %v3459_v46  ;;  %v1213_v41 = vpop.f32.mrb[25].mxu1 }
 0x206   : > { %v1612_v57 = vadd.f32 %v3562_v15, %v1435_v31  ;;  %v1438_v59 = vpop.f32.mrb[78].mxu0  ;;  %v1214_v25 = vadd.f32 %v1213_v41, %v3461_v1 }
 0x207   : > { %1675 = vst [vmem:[%s3568_s24 + $0x60] sm:$0xff] %v1611_v38  ;;  %v1439_v33 = vadd.f32 %v1438_v59, %v1182_v61  ;;  %v1440_v32 = vpop.f32.mrb[79].mxu0 }
 0x208   : > { %1676 = vst [vmem:[%s3568_s24 + $0x68] sm:$0xff] %v1612_v57  ;;  %v1441_v35 = vadd.f32 %v1440_v32, %v1184_v21  ;;  %v1217_v11 = vpop.f32.mrb[26].mxu1 }
 0x209   : > { %v1613_v44 = vadd.f32 %v3560_v3, %v1439_v33  ;;  %v1218_v63 = vadd.f32 %v1217_v11, %v3463_v47  ;;  %v1219_v46 = vpop.f32.mrb[27].mxu1 }
 0x20a   : > { %v1614_v18 = vadd.f32 %v3562_v15, %v1441_v35  ;;  %v1444_v34 = vpop.f32.mrb[80].mxu0  ;;  %v1220_v61 = vadd.f32 %v1219_v46, %v3465_v0 }
 0x20b   : > { %1677 = vst [vmem:[%s3568_s24 + $0x70] sm:$0xff] %v1613_v44  ;;  %v1445_v53 = vadd.f32 %v1444_v34, %v1188_v51  ;;  %v1446_v39 = vpop.f32.mrb[81].mxu0 }
 0x20c   : > { %1678 = vst [vmem:[%s3568_s24 + $0x78] sm:$0xff] %v1614_v18  ;;  %v1447_v45 = vadd.f32 %v1446_v39, %v1190_v30  ;;  %v1223_v36 = vpop.f32.mrb[28].mxu1 }
 0x20d   : > { %v1615_v1 = vadd.f32 %v3560_v3, %v1445_v53  ;;  %v1224_v56 = vadd.f32 %v1223_v36, %v3467_v5  ;;  %v1225_v47 = vpop.f32.mrb[29].mxu1 }
 0x20e   : > { %v1616_v21 = vadd.f32 %v3562_v15, %v1447_v45  ;;  %v1450_v26 = vpop.f32.mrb[82].mxu0  ;;  %v1226_v51 = vadd.f32 %v1225_v47, %v3469_v4 }
 0x20f   : > { %1679 = vst [vmem:[%s3568_s24 + $0x80] sm:$0xff] %v1615_v1  ;;  %v1451_v37 = vadd.f32 %v1450_v26, %v1194_v14  ;;  %v1452_v6 = vpop.f32.mrb[83].mxu0 }
 0x210   : > { %1680 = vst [vmem:[%s3568_s24 + $0x88] sm:$0xff] %v1616_v21  ;;  %v1453_v54 = vadd.f32 %v1452_v6, %v1196_v60  ;;  %v1229_v28 = vpop.f32.mrb[30].mxu1 }
 0x211   : > { %v1617_v0 = vadd.f32 %v3560_v3, %v1451_v37  ;;  %v1230_v27 = vadd.f32 %v1229_v28, %v3471_v49  ;;  %v1231_v5 = vpop.f32.mrb[31].mxu1 }
 0x212   : > { %v1618_v30 = vadd.f32 %v3562_v15, %v1453_v54  ;;  %v1456_v48 = vpop.f32.mrb[84].mxu0  ;;  %v1232_v14 = vadd.f32 %v1231_v5, %v3473_v58 }
 0x213   : > { %1681 = vst [vmem:[%s3568_s24 + $0x90] sm:$0xff] %v1617_v0  ;;  %v1457_v9 = vadd.f32 %v1456_v48, %v1200_v52  ;;  %v1458_v31 = vpop.f32.mrb[85].mxu0 }
 0x214   : > { %1682 = vst [vmem:[%s3568_s24 + $0x98] sm:$0xff] %v1618_v30  ;;  %v1459_v38 = vadd.f32 %v1458_v31, %v1202_v20  ;;  %v1235_v57 = vpop.f32.mrb[32].mxu1 }
 0x215   : > { %v1619_v4 = vadd.f32 %v3560_v3, %v1457_v9  ;;  %v1236_v59 = vadd.f32 %v1235_v57, %v3475_v24  ;;  %v1237_v49 = vpop.f32.mrb[33].mxu1 }
 0x216   : > { %v1620_v60 = vadd.f32 %v3562_v15, %v1459_v38  ;;  %v1462_v50 = vpop.f32.mrb[86].mxu0  ;;  %v1238_v52 = vadd.f32 %v1237_v49, %v3477_v55 }
 0x217   : > { %1683 = vst [vmem:[%s3568_s24 + $0xa0] sm:$0xff] %v1619_v4  ;;  %v1463_v41 = vadd.f32 %v1462_v50, %v1206_v17  ;;  %v1464_v33 = vpop.f32.mrb[87].mxu0 }
 0x218   : > { %1684 = vst [vmem:[%s3568_s24 + $0xa8] sm:$0xff] %v1620_v60  ;;  %v1465_v32 = vadd.f32 %v1464_v33, %v1208_v12  ;;  %v1241_v35 = vpop.f32.mrb[34].mxu1 }
 0x219   : > { %v1621_v58 = vadd.f32 %v3560_v3, %v1463_v41  ;;  %v1242_v18 = vadd.f32 %v1241_v35, %v3479_v19  ;;  %v1243_v24 = vpop.f32.mrb[35].mxu1 }
 0x21a   : > { %v1622_v20 = vadd.f32 %v3562_v15, %v1465_v32  ;;  %v1468_v44 = vpop.f32.mrb[88].mxu0  ;;  %v1244_v17 = vadd.f32 %v1243_v24, %v3481_v23 }
 0x21b   : > { %1685 = vst [vmem:[%s3568_s24 + $0xb0] sm:$0xff] %v1621_v58  ;;  %v1469_v11 = vadd.f32 %v1468_v44, %v1212_v22  ;;  %v1470_v34 = vpop.f32.mrb[89].mxu0 }
 0x21c   : > { %1686 = vst [vmem:[%s3568_s24 + $0xb8] sm:$0xff] %v1622_v20  ;;  %v1471_v46 = vadd.f32 %v1470_v34, %v1214_v25  ;;  %v1247_v53 = vpop.f32.mrb[36].mxu1 }
 0x21d   : > { %v1623_v55 = vadd.f32 %v3560_v3, %v1469_v11  ;;  %v1248_v45 = vadd.f32 %v1247_v53, %v3483_v29  ;;  %v1249_v19 = vpop.f32.mrb[37].mxu1 }
 0x21e   : > { %v1624_v12 = vadd.f32 %v3562_v15, %v1471_v46  ;;  %v1474_v39 = vpop.f32.mrb[90].mxu0  ;;  %v1250_v22 = vadd.f32 %v1249_v19, %v3485_v62  ;;  %v3894_v19 = vld [vmem:[#allocation23_spill] sm:$0xff] }
 0x21f   : > { %1687 = vst [vmem:[%s3568_s24 + $0xc0] sm:$0xff] %v1623_v55  ;;  %v1475_v1 = vadd.f32 %v1474_v39, %v1218_v63  ;;  %v1476_v21 = vpop.f32.mrb[91].mxu0 }
 0x220   : > { %1688 = vst [vmem:[%s3568_s24 + $0xc8] sm:$0xff] %v1624_v12  ;;  %v1477_v36 = vadd.f32 %v1476_v21, %v1220_v61  ;;  %v1253_v26 = vpop.f32.mrb[38].mxu1 }
 0x221   : > { %v1625_v23 = vadd.f32 %v3560_v3, %v1475_v1  ;;  %v1254_v37 = vadd.f32 %v1253_v26, %v3487_v7  ;;  %v1255_v29 = vpop.f32.mrb[39].mxu1 }
 0x222   : > { %v1626_v25 = vadd.f32 %v3562_v15, %v1477_v36  ;;  %v1480_v47 = vpop.f32.mrb[92].mxu0  ;;  %v1256_v63 = vadd.f32 %v1255_v29, %v3489_v10 }
 0x223   : > { %1689 = vst [vmem:[%s3568_s24 + $0xd0] sm:$0xff] %v1625_v23  ;;  %v1481_v6 = vadd.f32 %v1480_v47, %v1224_v56  ;;  %v1482_v54 = vpop.f32.mrb[93].mxu0 }
 0x224   : > { %1690 = vst [vmem:[%s3568_s24 + $0xd8] sm:$0xff] %v1626_v25  ;;  %v1483_v0 = vadd.f32 %v1482_v54, %v1226_v51  ;;  %v1259_v30 = vpop.f32.mrb[40].mxu1 }
 0x225   : > { %v1627_v62 = vadd.f32 %v3560_v3, %v1481_v6  ;;  %v1260_v48 = vadd.f32 %v1259_v30, %v3491_v42  ;;  %v1261_v7 = vpop.f32.mrb[41].mxu1  ;;  %v3896_v6 = vld [vmem:[#allocation25_spill] sm:$0xff] }
 0x226   : > { %v1628_v61 = vadd.f32 %v3562_v15, %v1483_v0  ;;  %v1486_v28 = vpop.f32.mrb[94].mxu0  ;;  %v1262_v56 = vadd.f32 %v1261_v7, %v3493_v2 }
 0x227   : > { %1691 = vst [vmem:[%s3568_s24 + $0xe0] sm:$0xff] %v1627_v62  ;;  %v1487_v5 = vadd.f32 %v1486_v28, %v1230_v27  ;;  %v1488_v9 = vpop.f32.mrb[95].mxu0 }
 0x228   : > { %1692 = vst [vmem:[%s3568_s24 + $0xe8] sm:$0xff] %v1628_v61  ;;  %v1489_v31 = vadd.f32 %v1488_v9, %v1232_v14  ;;  %v1265_v38 = vpop.f32.mrb[42].mxu1 }
 0x229   : > { %v1629_v10 = vadd.f32 %v3560_v3, %v1487_v5  ;;  %v1266_v60 = vadd.f32 %v1265_v38, %v3495_v40  ;;  %v1267_v42 = vpop.f32.mrb[43].mxu1 }
 0x22a   : > { %v1630_v51 = vadd.f32 %v3562_v15, %v1489_v31  ;;  %v1492_v4 = vpop.f32.mrb[96].mxu0  ;;  %v1268_v27 = vadd.f32 %v1267_v42, %v3497_v8  ;;  %v3898_v31 = vld [vmem:[#allocation27_spill] sm:$0xff] }
 0x22b   : > { %1693 = vst [vmem:[%s3568_s24 + $0xf0] sm:$0xff] %v1629_v10  ;;  %v1493_v57 = vadd.f32 %v1492_v4, %v1236_v59  ;;  %v1494_v50 = vpop.f32.mrb[97].mxu0 }
 0x22c   : > { %1694 = vst [vmem:[%s3568_s24 + $0xf8] sm:$0xff] %v1630_v51  ;;  %v1495_v49 = vadd.f32 %v1494_v50, %v1238_v52  ;;  %v1271_v41 = vpop.f32.mrb[44].mxu1 }
 0x22d   : > { %v1631_v2 = vadd.f32 %v3560_v3, %v1493_v57  ;;  %v1272_v32 = vadd.f32 %v1271_v41, %v3499_v43  ;;  %v1273_v40 = vpop.f32.mrb[45].mxu1 }
 0x22e   : > { %v1632_v14 = vadd.f32 %v3562_v15, %v1495_v49  ;;  %v1498_v33 = vpop.f32.mrb[98].mxu0  ;;  %v1274_v59 = vadd.f32 %v1273_v40, %v3501_v13 }
 0x22f   : > { %1695 = vst [vmem:[%s3568_s24 + $0x100] sm:$0xff] %v1631_v2  ;;  %v1499_v58 = vadd.f32 %v1498_v33, %v1242_v18  ;;  %v1500_v20 = vpop.f32.mrb[99].mxu0  ;;  %v3893_v18 = vld [vmem:[#allocation22_spill] sm:$0xff] }
 0x230   : > { %1696 = vst [vmem:[%s3568_s24 + $0x108] sm:$0xff] %v1632_v14  ;;  %v1501_v35 = vadd.f32 %v1500_v20, %v1244_v17  ;;  %v1277_v44 = vpop.f32.mrb[46].mxu1  ;;  %v3900_v14 = vld [vmem:[#allocation29_spill] sm:$0xff] }
 0x231   : > { %v1633_v8 = vadd.f32 %v3560_v3, %v1499_v58  ;;  %v1278_v11 = vadd.f32 %v1277_v44, %v3503_v16  ;;  %v1279_v43 = vpop.f32.mrb[47].mxu1 }
 0x232   : > { %v1634_v52 = vadd.f32 %v3562_v15, %v1501_v35  ;;  %v1504_v24 = vpop.f32.mrb[100].mxu0  ;;  %v1280_v55 = vadd.f32 %v1279_v43, %v3893_v18 }
 0x233   : > { %1697 = vst [vmem:[%s3568_s24 + $0x110] sm:$0xff] %v1633_v8  ;;  %v1505_v34 = vadd.f32 %v1504_v24, %v1248_v45  ;;  %v1506_v46 = vpop.f32.mrb[101].mxu0  ;;  %v3895_v45 = vld [vmem:[#allocation24_spill] sm:$0xff]  ;;  %v3902_v24 = vld [vmem:[#allocation31_spill] sm:$0xff] }
 0x234   : > { %1698 = vst [vmem:[%s3568_s24 + $0x118] sm:$0xff] %v1634_v52  ;;  %v1507_v12 = vadd.f32 %v1506_v46, %v1250_v22  ;;  %v1283_v53 = vpop.f32.mrb[48].mxu1 }
 0x235   : > { %v1635_v13 = vadd.f32 %v3560_v3, %v1505_v34  ;;  %v1284_v1 = vadd.f32 %v1283_v53, %v3894_v19  ;;  %v1285_v16 = vpop.f32.mrb[49].mxu1  ;;  %v3904_v19 = vld [vmem:[#allocation33_spill] sm:$0xff] }
 0x236   : > { %v1636_v17 = vadd.f32 %v3562_v15, %v1507_v12  ;;  %v1510_v39 = vpop.f32.mrb[102].mxu0  ;;  %v1286_v23 = vadd.f32 %v1285_v16, %v3895_v45  ;;  %v3905_v45 = vld [vmem:[#allocation34_spill] sm:$0xff] }
 0x237   : > { %1699 = vst [vmem:[%s3568_s24 + $0x120] sm:$0xff] %v1635_v13  ;;  %v1511_v21 = vadd.f32 %v1510_v39, %v1254_v37  ;;  %v1512_v36 = vpop.f32.mrb[103].mxu0  ;;  %v3897_v37 = vld [vmem:[#allocation26_spill] sm:$0xff] }
 0x238   : > { %1700 = vst [vmem:[%s3568_s24 + $0x128] sm:$0xff] %v1636_v17  ;;  %v1513_v25 = vadd.f32 %v1512_v36, %v1256_v63  ;;  %v1289_v47 = vpop.f32.mrb[50].mxu1 }
 0x239   : > { %v1637_v22 = vadd.f32 %v3560_v3, %v1511_v21  ;;  %v1290_v54 = vadd.f32 %v1289_v47, %v3896_v6  ;;  %v1291_v0 = vpop.f32.mrb[51].mxu1 }
 0x23a   : > { %v1638_v26 = vadd.f32 %v3562_v15, %v1513_v25  ;;  %v1516_v29 = vpop.f32.mrb[104].mxu0  ;;  %v1292_v30 = vadd.f32 %v1291_v0, %v3897_v37 }
 0x23b   : > { %1701 = vst [vmem:[%s3568_s24 + $0x130] sm:$0xff] %v1637_v22  ;;  %v1517_v62 = vadd.f32 %v1516_v29, %v1260_v48  ;;  %v1518_v61 = vpop.f32.mrb[105].mxu0  ;;  %v3899_v48 = vld [vmem:[#allocation28_spill] sm:$0xff] }
 0x23c   : > { %1702 = vst [vmem:[%s3568_s24 + $0x138] sm:$0xff] %v1638_v26  ;;  %v1519_v28 = vadd.f32 %v1518_v61, %v1262_v56  ;;  %v1295_v5 = vpop.f32.mrb[52].mxu1 }
 0x23d   : > { %v1639_v63 = vadd.f32 %v3560_v3, %v1517_v62  ;;  %v1296_v10 = vadd.f32 %v1295_v5, %v3898_v31  ;;  %v1297_v51 = vpop.f32.mrb[53].mxu1 }
 0x23e   : > { %v1640_v7 = vadd.f32 %v3562_v15, %v1519_v28  ;;  %v1522_v9 = vpop.f32.mrb[106].mxu0  ;;  %v1298_v42 = vadd.f32 %v1297_v51, %v3899_v48 }
 0x23f   : > { %1703 = vst [vmem:[%s3568_s24 + $0x140] sm:$0xff] %v1639_v63  ;;  %v1523_v38 = vadd.f32 %v1522_v9, %v1266_v60  ;;  %v1524_v4 = vpop.f32.mrb[107].mxu0  ;;  %v3901_v60 = vld [vmem:[#allocation30_spill] sm:$0xff] }
 0x240   : > { %1704 = vst [vmem:[%s3568_s24 + $0x148] sm:$0xff] %v1640_v7  ;;  %v1525_v57 = vadd.f32 %v1524_v4, %v1268_v27  ;;  %v1301_v49 = vpop.f32.mrb[54].mxu1 }
 0x241   : > { %v1641_v56 = vadd.f32 %v3560_v3, %v1523_v38  ;;  %v1302_v41 = vadd.f32 %v1301_v49, %v3900_v14  ;;  %v1303_v33 = vpop.f32.mrb[55].mxu1  ;;  %v3908_v14 = vld [vmem:[#allocation37_spill] sm:$0xff] }
 0x242   : > { %v1642_v50 = vadd.f32 %v3562_v15, %v1525_v57  ;;  %v1528_v2 = vpop.f32.mrb[108].mxu0  ;;  %v1304_v20 = vadd.f32 %v1303_v33, %v3901_v60  ;;  %v3909_v60 = vld [vmem:[#allocation38_spill] sm:$0xff] }
 0x243   : > { %1705 = vst [vmem:[%s3568_s24 + $0x150] sm:$0xff] %v1641_v56  ;;  %v1529_v40 = vadd.f32 %v1528_v2, %v1272_v32  ;;  %v1530_v58 = vpop.f32.mrb[109].mxu0  ;;  %v3903_v32 = vld [vmem:[#allocation32_spill] sm:$0xff] }
 0x244   : > { %1706 = vst [vmem:[%s3568_s24 + $0x158] sm:$0xff] %v1642_v50  ;;  %v1531_v35 = vadd.f32 %v1530_v58, %v1274_v59  ;;  %v1307_v52 = vpop.f32.mrb[56].mxu1 }
 0x245   : > { %v1643_v27 = vadd.f32 %v3560_v3, %v1529_v40  ;;  %v1308_v43 = vadd.f32 %v1307_v52, %v3902_v24  ;;  %v1309_v34 = vpop.f32.mrb[57].mxu1 }
 0x246   : > { %v1644_v8 = vadd.f32 %v3562_v15, %v1531_v35  ;;  %v1534_v44 = vpop.f32.mrb[110].mxu0  ;;  %v1310_v12 = vadd.f32 %v1309_v34, %v3903_v32 }
 0x247   : > { %1707 = vst [vmem:[%s3568_s24 + $0x160] sm:$0xff] %v1643_v27  ;;  %v1535_v46 = vadd.f32 %v1534_v44, %v1278_v11  ;;  %v1536_v18 = vpop.f32.mrb[111].mxu0 }
 0x248   : > { %1708 = vst [vmem:[%s3568_s24 + $0x168] sm:$0xff] %v1644_v8  ;;  %v1537_v13 = vadd.f32 %v1536_v18, %v1280_v55  ;;  %v1313_v53 = vpop.f32.mrb[58].mxu1 }
 0x249   : > { %v1645_v59 = vadd.f32 %v3560_v3, %v1535_v46  ;;  %v1314_v16 = vadd.f32 %v1313_v53, %v3904_v19  ;;  %v1315_v21 = vpop.f32.mrb[59].mxu1 }
 0x24a   : > { %v1646_v17 = vadd.f32 %v3562_v15, %v1537_v13  ;;  %v1540_v39 = vpop.f32.mrb[112].mxu0  ;;  %v1316_v25 = vadd.f32 %v1315_v21, %v3905_v45 }
 0x24b   : > { %1709 = vst [vmem:[%s3568_s24 + $0x170] sm:$0xff] %v1645_v59  ;;  %v1541_v36 = vadd.f32 %v1540_v39, %v1284_v1  ;;  %v1542_v11 = vpop.f32.mrb[113].mxu0 }
 0x24c   : > { %1710 = vst [vmem:[%s3568_s24 + $0x178] sm:$0xff] %v1646_v17  ;;  %v1543_v55 = vadd.f32 %v1542_v11, %v1286_v23 }
 0x24d   : > { %v1647_v22 = vadd.f32 %v3560_v3, %v1541_v36 }
 0x24e   : > { %v1648_v26 = vadd.f32 %v3562_v15, %v1543_v55  ;;  %v1546_v47 = vpop.f32.mrb[114].mxu0 }
 0x24f   : > { %1711 = vst [vmem:[%s3568_s24 + $0x180] sm:$0xff] %v1647_v22  ;;  %v1547_v29 = vadd.f32 %v1546_v47, %v1290_v54  ;;  %v1548_v6 = vpop.f32.mrb[115].mxu0 }
 0x250   : > { %1712 = vst [vmem:[%s3568_s24 + $0x188] sm:$0xff] %v1648_v26  ;;  %v1549_v0 = vadd.f32 %v1548_v6, %v1292_v30  ;;  %v3906_v30 = vld [vmem:[#allocation35_spill] sm:$0xff] }
 0x251   : > { %v1649_v1 = vadd.f32 %v3560_v3, %v1547_v29 }
 0x252   : > { %v1650_v62 = vadd.f32 %v3562_v15, %v1549_v0  ;;  %v1552_v61 = vpop.f32.mrb[116].mxu0 }
 0x253   : > { %1713 = vst [vmem:[%s3568_s24 + $0x190] sm:$0xff] %v1649_v1  ;;  %v1553_v23 = vadd.f32 %v1552_v61, %v1296_v10  ;;  %v1554_v37 = vpop.f32.mrb[117].mxu0  ;;  %v3907_v10 = vld [vmem:[#allocation36_spill] sm:$0xff] }
 0x254   : > { %1714 = vst [vmem:[%s3568_s24 + $0x198] sm:$0xff] %v1650_v62  ;;  %v1555_v28 = vadd.f32 %v1554_v37, %v1298_v42  ;;  %v1576_v7 = vpop.f32.mrb[60].mxu1 }
 0x255   : > { %v1651_v63 = vadd.f32 %v3560_v3, %v1553_v23  ;;  %v2257_v9 = vadd.f32 %v1576_v7, %v3906_v30  ;;  %v1578_v51 = vpop.f32.mrb[61].mxu1 }
 0x256   : > { %v1652_v54 = vadd.f32 %v3562_v15, %v1555_v28  ;;  %v1558_v5 = vpop.f32.mrb[118].mxu0  ;;  %v2258_v4 = vadd.f32 %v1578_v51, %v3907_v10 }
 0x257   : > { %1715 = vst [vmem:[%s3568_s24 + $0x1a0] sm:$0xff] %v1651_v63  ;;  %v1559_v31 = vadd.f32 %v1558_v5, %v1302_v41  ;;  %v1560_v38 = vpop.f32.mrb[119].mxu0  ;;  %v1659_v42 = vadd.f32 %v2257_v9, %v3560_v3 }
 0x258   : > { %1716 = vst [vmem:[%s3568_s24 + $0x1a8] sm:$0xff] %v1652_v54  ;;  %v1561_v48 = vadd.f32 %v1560_v38, %v1304_v20  ;;  %v1660_v56 = vadd.f32 %v2258_v4, %v3562_v15  ;;  %v1582_v49 = vpop.f32.mrb[62].mxu1 }
 0x259   : > { %v1653_v57 = vadd.f32 %v3560_v3, %v1559_v31  ;;  %1723 = vst [vmem:[%s3568_s24 + $0x1e0] sm:$0xff] %v1659_v42  ;;  %v2259_v41 = vadd.f32 %v1582_v49, %v3908_v14  ;;  %v1584_v40 = vpop.f32.mrb[63].mxu1 }
 0x25a   : > { %v1654_v50 = vadd.f32 %v3562_v15, %v1561_v48  ;;  %v1564_v2 = vpop.f32.mrb[120].mxu0  ;;  %1724 = vst [vmem:[%s3568_s24 + $0x1e8] sm:$0xff] %v1660_v56  ;;  %v2260_v20 = vadd.f32 %v1584_v40, %v3909_v60 }
 0x25b   : > { %1717 = vst [vmem:[%s3568_s24 + $0x1b0] sm:$0xff] %v1653_v57  ;;  %v1565_v33 = vadd.f32 %v1564_v2, %v1308_v43  ;;  %v1566_v58 = vpop.f32.mrb[121].mxu0  ;;  %v1661_v27 = vadd.f32 %v2259_v41, %v3560_v3 }
 0x25c   : > { %1718 = vst [vmem:[%s3568_s24 + $0x1b8] sm:$0xff] %v1654_v50  ;;  %v1567_v35 = vadd.f32 %v1566_v58, %v1310_v12  ;;  %v1662_v52 = vadd.f32 %v2260_v20, %v3562_v15 }
 0x25d   : > { %v1655_v8 = vadd.f32 %v3560_v3, %v1565_v33  ;;  %1725 = vst [vmem:[%s3568_s24 + $0x1f0] sm:$0xff] %v1661_v27 }
 0x25e   : > { %v1656_v44 = vadd.f32 %v3562_v15, %v1567_v35  ;;  %v1570_v24 = vpop.f32.mrb[122].mxu0  ;;  %1726 = vst [vmem:[%s3568_s24 + $0x1f8] sm:$0xff] %v1662_v52 }
 0x25f   : > { %1719 = vst [vmem:[%s3568_s24 + $0x1c0] sm:$0xff] %v1655_v8  ;;  %v1571_v43 = vadd.f32 %v1570_v24, %v1314_v16  ;;  %v1572_v34 = vpop.f32.mrb[123].mxu0 }
 0x260   : > { %1720 = vst [vmem:[%s3568_s24 + $0x1c8] sm:$0xff] %v1656_v44  ;;  %v1573_v46 = vadd.f32 %v1572_v34, %v1316_v25 }
 0x261   : > { %v1657_v18 = vadd.f32 %v3560_v3, %v1571_v43 }
 0x262   : > { %v1658_v32 = vadd.f32 %v3562_v15, %v1573_v46 }
 0x263   : > { %1721 = vst [vmem:[%s3568_s24 + $0x1d0] sm:$0xff] %v1657_v18 }
 0x264   : > { %1722 = vst [vmem:[%s3568_s24 + $0x1d8] sm:$0xff] %v1658_v32 }
 0x265   : > { %2463 = shalt.err (!%p2460_p12)
}
 0x266   : > { %s2464_s10 = scalar_lea.hbm %s3750_s26, 8192  ;;  %s2468_s20 = scalar_lea.hbm %s3841_s5, 32768 }
 0x267   : > { %p2465_p13 = scmp.ne.s32.totalorder %s3750_s26, %s2464_s10  ;;  %p2469_p5 = scmp.lt.u32.totalorder %s3750_s26, %s3841_s5 }
 0x268   : > { %p2470_p2 = scmp.lt.u32.totalorder %s2468_s20, %s2464_s10  ;;  %p2472_p10 = scmp.lt.u32.totalorder %s2464_s10, %s3750_s26 }
 0x269   : > { %p2466_p9 = pnand %p2465_p13, %p3910_p11 }
 0x26a   : > { %p2471_p7 = por %p2470_p2, %p2469_p5 }
 0x26b   : > { %p2467_p0 = pneg %p2466_p9 }
 0x26c   : > { %p2473_p1 = por %p2472_p10, %p2471_p7 }
 0x26e   : > { %p2474_p4 = pnand %p2473_p1, %p2467_p0 }
 0x270   : > { %2477 = shalt.err (!%p2474_p4)
}
 0x271   : > { %s2608_s14 = smov 256   ;;  %s2609_s7 = smov 512  }
 0x272   : > { %s2610_s27 = smov 16  }
 0x273   : > { %2269 = dma.vmem_to_hbm [thread:$0]  (%p3910_p11), %s3753_s15, 8192, %s3750_s26, %s3760_s16, %s2608_s14, %s2609_s7, %s2610_s27  }
 0x274 PF: > { %s3911_s12 = sld [smem:[#allocation12_spill]]  ;;  %s3912_s11 = sld [smem:[#allocation21_spill]] }
 0x275   : > { %p2275_p3 = scmp.ge.s32.totalorder %s2600_s6, 2 }
 0x27a   : > { %s1759_s18 = sand.u32 1, %s3911_s12   ;;  %p3913_p8 = scmp.ne.s32.totalorder %s3912_s11, 0 }
 0x27b   : > { %s1760_s8 = scalar_lea.sflag [#allocation4], %s1759_s18 }
 0x27c   : > { %p2272_p6 = pnand %p2275_p3, %p3913_p8 }
 0x27e   : > { %2543 = dma.done.wait (!%p2272_p6), %s1760_s8, 8192  }
 0x27f   : > { %2545 = vsyncadd (!%p2272_p6), %s1760_s8, 4294959104  ;;  %s24_s6 = sadd.s32 1, %s2600_s6   ;;  %s3915_s21 = sld [smem:[#allocation13_spill]] }
 0x280   : > { %p3789_p12 = scmp.ge.s32.totalorder %s24_s6, 6   ;;  %s3916_s20 = sld [smem:[#allocation20_spill]] }
 0x281   : > { %s3917_s15 = sld [smem:[#allocation19_spill]]  ;;  %s3918_s26 = sld [smem:[#allocation14_spill]] }
 0x282   : > { %s3919_s16 = sld [smem:[#allocation18_spill]]  ;;  %s3920_s27 = sld [smem:[#allocation15_spill]] }
 0x283   : > { %s3921_s29 = sld [smem:[#allocation16_spill]]  ;;  %s3922_s10 = sld [smem:[#allocation17_spill]] }
 0x284   : > { %s3923_s18 = smov %s2552_s19  ;;  %s3928_s24 = smov %s2576_s25 }
 0x285   : > { %s3924_s19 = smov %s3915_s21  ;;  %s3925_s21 = smov %s2564_s22 }
 0x286   : > { %s3926_s22 = smov %s2568_s23  ;;  %s3931_s28 = smov %s2596_s30 }
 0x287   : > { %s3927_s23 = smov %s3917_s15  ;;  %s3929_s25 = smov %s3918_s26 }
 0x288   : > { %s3930_s26 = smov %s3919_s16  ;;  %23 = sbr.rel (!%p3789_p12) target bundleno = 12 (0xc), region = 135 }
 0x289   : > { %s3932_s30 = smov %s3922_s10 }
 0x28f   :  { %1765 = vsyncpa [#allocation3], 1 }
 0x290   :  { %1767 = vsyncpa [#allocation3 + $0x1], 1 }
 0x291   :  { %1768 = vsyncpa [#allocation6], 1 }
 0x292   :  { %1770 = vsyncpa [#allocation6 + $0x1], 1 }
 0x293   :  { %1771 = vsyncpa [#allocation4], 1 }
 0x294   :  { %1773 = vsyncpa [#allocation4 + $0x1], 1 }

</bundles_post_ra>
